<compile_context>
chip_gen: v7x
topology: tpu7x:2x2x1
jax: 0.10.0
libtpu: 0.0.40
codegen_flags: <defaults>
</compile_context>

<pallas_src>
import functools

import jax
import jax.numpy as jnp
from jax.experimental import pallas as pl
from jax.experimental.pallas import tpu as pltpu


def _round_up(x, m):
    return ((x + m - 1) // m) * m


# ----------------------------------------------------------------------------
# Pallas kernel: tiled  act(A @ W + b)  with f32 accumulation
# ----------------------------------------------------------------------------
def _matmul_bias_act_kernel(a_ref, w_ref, b_ref, o_ref, acc_ref, *, act):
    """One (tm, tn) output tile; K is the last ('arbitrary') grid axis."""
    k = pl.program_id(2)

    @pl.when(k == 0)
    def _():
        acc_ref[...] = jnp.zeros_like(acc_ref)

    acc_ref[...] += jnp.dot(a_ref[...], w_ref[...],
                            preferred_element_type=jnp.float32)

    @pl.when(k == pl.num_programs(2) - 1)
    def _():
        acc = acc_ref[...] + b_ref[...]          # bias + activation at finalize only
        if act == "relu":
            acc = jnp.maximum(acc, 0.0)
        elif act == "sigmoid":
            acc = jax.nn.sigmoid(acc)
        o_ref[...] = acc.astype(o_ref.dtype)


def matmul_bias_act(a, w_p, b_p, *, n_valid, act="none", out_dtype=jnp.bfloat16):
    """y = act(a @ W + b), sliced to (M, n_valid).

    a    : (M, K)  activations (any float dtype; cast to bf16 here — a no-op
           when the producer already emitted bf16).
    w_p  : (Kp, Np) bf16, pre-padded + pre-transposed at init.
    b_p  : (1, Np)  f32,  pre-padded at init.
    """
    M, K = a.shape
    Kp, Np = w_p.shape
    assert b_p.shape == (1, Np) and K <= Kp

    a = a.astype(jnp.bfloat16)
    if Kp > K:                                   # only when K > 2048 (rare)
        a = jnp.pad(a, ((0, 0), (0, Kp - K)))

    # Tile sizes (Kp/Np were built by prepare_* with the same formulas):
    #   K: single full-dim block when K <= 2048  -> no K padding, no revisits.
    #   N: lane-dense (>=128), capped at 512.
    tk = Kp if Kp <= 2048 else 512
    tn = Np if Np <= 512 else 512
    single_n = (Np // tn) == 1

    if M > 512:
        tm = 512
    elif single_n and M >= 16:
        # Ensure >=2 blocks along a 'parallel' axis so both v7x TCs get work.
        tm = _round_up((M + 1) // 2, 8)
    else:
        tm = _round_up(M, 8)
    Mp = _round_up(M, tm)
    if Mp > M:
        a = jnp.pad(a, ((0, Mp - M), (0, 0)))

    grid = (Mp // tm, Np // tn, Kp // tk)
    out = pl.pallas_call(
        functools.partial(_matmul_bias_act_kernel, act=act),
        out_shape=jax.ShapeDtypeStruct((Mp, Np), out_dtype),
        grid_spec=pltpu.PrefetchScalarGridSpec(
            num_scalar_prefetch=0,
            grid=grid,
            in_specs=[
                pl.BlockSpec((tm, tk), lambda i, j, k: (i, k)),
                pl.BlockSpec((tk, tn), lambda i, j, k: (k, j)),
                pl.BlockSpec((1, tn), lambda i, j, k: (0, j)),
            ],
            out_specs=pl.BlockSpec((tm, tn), lambda i, j, k: (i, j)),
            scratch_shapes=[pltpu.VMEM((tm, tn), jnp.float32)],
        ),
        compiler_params=pltpu.CompilerParams(
            dimension_semantics=("parallel", "parallel", "arbitrary"),
        ),
    )(a, w_p, b_p)
    return out[:M, :n_valid]


# ----------------------------------------------------------------------------
# Conv / conv-transpose: patch extraction (XLA glue, bf16) + Pallas matmul
# ----------------------------------------------------------------------------
# TODO(synk): stream im2col tile-by-tile inside the kernel instead of
# materializing the full patches matrix in HBM.
def _im2col(x_nhwc, k, stride, pad):
    """Returns (B*Ho*Wo, k*k*C) patches (same dtype as x), plus B, Ho, Wo."""
    B, H, W, C = x_nhwc.shape
    xp = jnp.pad(x_nhwc, ((0, 0), (pad, pad), (pad, pad), (0, 0)))
    Hp, Wp = H + 2 * pad, W + 2 * pad
    Ho = (Hp - k) // stride + 1
    Wo = (Wp - k) // stride + 1
    cols = []
    for i in range(k):
        for j in range(k):
            cols.append(xp[:, i:i + stride * Ho:stride, j:j + stride * Wo:stride, :])
    patches = jnp.stack(cols, axis=3)            # (B, Ho, Wo, k*k, C)
    return patches.reshape(B * Ho * Wo, k * k * C), B, Ho, Wo


def conv2d(x_nhwc, w_p, b_p, *, cout, k, stride, padding, act,
           out_dtype=jnp.bfloat16):
    """PyTorch Conv2d semantics; weights pre-packed at init."""
    patches, B, Ho, Wo = _im2col(x_nhwc, k, stride, padding)
    y = matmul_bias_act(patches, w_p, b_p, n_valid=cout, act=act,
                        out_dtype=out_dtype)
    return y.reshape(B, Ho, Wo, cout)


def conv_transpose2d_s2(x_nhwc, w_p, b_p, *, cout, act, out_dtype=jnp.bfloat16):
    """PyTorch ConvTranspose2d(k=3, stride=2, padding=1, output_padding=1).

    Sub-pixel decomposition on the UN-dilated input (no 75%-zero MACs):
    2x2 patches -> one matmul producing (r, s, Cout) columns -> depth-to-space.
    The effective weight matrix and tiled bias were precomputed at init.
    """
    B, H, W, C = x_nhwc.shape
    xp = jnp.pad(x_nhwc, ((0, 0), (0, 1), (0, 1), (0, 0)))
    cols = [xp[:, dr:dr + H, ds:ds + W, :] for dr in (0, 1) for ds in (0, 1)]
    patches = jnp.concatenate(cols, axis=-1).reshape(B * H * W, 4 * C)
    y = matmul_bias_act(patches, w_p, b_p, n_valid=4 * cout, act=act,
                        out_dtype=out_dtype)                 # (B*H*W, 4*Cout)
    y = y.reshape(B, H, W, 2, 2, cout)
    y = jnp.transpose(y, (0, 1, 3, 2, 4, 5)).reshape(B, 2 * H, 2 * W, cout)
    return y


# ----------------------------------------------------------------------------
# Parameter init (PyTorch layout) and one-time packing to padded bf16
# ----------------------------------------------------------------------------
def init_dae_params(key, nz, imSize, fSize):
    """Raw parameters in PyTorch layouts (what load_state_dict would hold)."""
    inSize = imSize // 16
    NZ = nz                                      # multimodalZ=False
    ks = jax.random.split(key, 20)
    n = lambda k, shape: 0.1 * jax.random.normal(k, shape, jnp.float32)
    raw = {
        # encoder convs: (Cout, Cin, 5, 5)
        "enc1_w": n(ks[0], (fSize, 3, 5, 5)),             "enc1_b": n(ks[1], (fSize,)),
        "enc2_w": n(ks[2], (fSize * 2, fSize, 5, 5)),     "enc2_b": n(ks[3], (fSize * 2,)),
        "enc3_w": n(ks[4], (fSize * 4, fSize * 2, 5, 5)), "enc3_b": n(ks[5], (fSize * 4,)),
        "enc4_w": n(ks[6], (fSize * 8, fSize * 4, 5, 5)), "enc4_b": n(ks[7], (fSize * 8,)),
        # linears in PyTorch (out, in) layout
        "enc5_w": n(ks[8], (NZ, fSize * 8 * inSize * inSize)), "enc5_b": n(ks[9], (NZ,)),
        "dec1_w": n(ks[10], (fSize * 8 * inSize * inSize, NZ)),
        "dec1_b": n(ks[11], (fSize * 8 * inSize * inSize,)),
        # decoder conv-transposes: (Cin, Cout, 3, 3)
        "dec2_w": n(ks[12], (fSize * 8, fSize * 4, 3, 3)), "dec2_b": n(ks[13], (fSize * 4,)),
        "dec3_w": n(ks[14], (fSize * 4, fSize * 2, 3, 3)), "dec3_b": n(ks[15], (fSize * 2,)),
        "dec4_w": n(ks[16], (fSize * 2, fSize, 3, 3)),     "dec4_b": n(ks[17], (fSize,)),
        "dec5_w": n(ks[18], (fSize, 3, 3, 3)),             "dec5_b": n(ks[19], (3,)),
    }
    return raw, inSize


def _prep_linear(w, b):
    """(K, N) f32 weight + (N,) bias -> padded bf16 (Kp, Np) + f32 (1, Np)."""
    K, N = w.shape
    tn = min(512, _round_up(N, 128))
    Np = _round_up(N, tn)
    Kp = K if K <= 2048 else _round_up(K, 512)
    w_p = jnp.pad(w, ((0, Kp - K), (0, Np - N))).astype(jnp.bfloat16)
    b_p = jnp.pad(b.astype(jnp.float32), (0, Np - N)).reshape(1, Np)
    return w_p, b_p


def _prep_conv(w, b):
    """(Cout, Cin, kh, kw) -> im2col weight matrix (kh*kw*Cin, Cout), packed."""
    Cout, Cin, kh, kw = w.shape
    w_mat = jnp.transpose(w, (2, 3, 1, 0)).reshape(kh * kw * Cin, Cout)
    return _prep_linear(w_mat, b)


def _prep_deconv(w, b):
    """(Cin, Cout, 3, 3) -> sub-pixel weight (4*Cin, 4*Cout), packed.

    out[2i+r, 2j+s, co] = sum_{dr,ds,ci} x[i+dr, j+ds, ci] * w[ci,co,1+r-2dr,1+s-2ds]
    """
    Cin, Cout, kh, kw = w.shape
    assert (kh, kw) == (3, 3)
    w_eff = jnp.zeros((2, 2, Cin, 2, 2, Cout), w.dtype)
    for dr in (0, 1):
        for ds in (0, 1):
            for r in (0, 1):
                for s in (0, 1):
                    kh_i = 1 + r - 2 * dr
                    kw_i = 1 + s - 2 * ds
                    if 0 <= kh_i < 3 and 0 <= kw_i < 3:
                        w_eff = w_eff.at[dr, ds, :, r, s, :].set(w[:, :, kh_i, kw_i])
    w_mat = w_eff.reshape(4 * Cin, 4 * Cout)
    b_rep = jnp.tile(b, 4)                       # column order is (r, s, co)
    return _prep_linear(w_mat, b_rep)


def prepare_dae_params(raw, fSize, inSize):
    """One-time weight packing: all per-forward weight prep lives here."""
    C8 = fSize * 8
    p = {}
    for name in ("enc1", "enc2", "enc3", "enc4"):
        p[name] = _prep_conv(raw[name + "_w"], raw[name + "_b"])
    # enc5: fold the PyTorch (C,H,W)-flatten into the row order, pre-transpose.
    w = raw["enc5_w"]                            # (NZ, C*H*W) in CHW order
    NZ = w.shape[0]
    w_t = (w.T.reshape(C8, inSize, inSize, NZ)
              .transpose(1, 2, 0, 3).reshape(inSize * inSize * C8, NZ))
    p["enc5"] = _prep_linear(w_t, raw["enc5_b"])
    # dec1: permute output columns so its result is directly NHWC.
    w = raw["dec1_w"].T                          # (NZ, C*H*W) in CHW order
    w_t = (w.reshape(NZ, C8, inSize, inSize)
             .transpose(0, 2, 3, 1).reshape(NZ, inSize * inSize * C8))
    b = (raw["dec1_b"].reshape(C8, inSize, inSize)
                       .transpose(1, 2, 0).reshape(-1))
    p["dec1"] = _prep_linear(w_t, b)
    for name in ("dec2", "dec3", "dec4", "dec5"):
        p[name] = _prep_deconv(raw[name + "_w"], raw[name + "_b"])
    return p


# ----------------------------------------------------------------------------
# DAE forward
# ----------------------------------------------------------------------------
def dae_forward(params, x_nchw, noise_nchw, *, sigma, fSize, inSize, nz):
    C8 = fSize * 8
    # corrupt: x + sigma*noise, fused by XLA into the bf16 cast feeding enc1
    # (perf review: a dedicated elementwise Pallas kernel was pure overhead).
    x_corr = x_nchw + sigma * noise_nchw
    # ---- encode ----
    h = jnp.transpose(x_corr, (0, 2, 3, 1)).astype(jnp.bfloat16)   # NHWC bf16
    h = conv2d(h, *params["enc1"], cout=fSize,     k=5, stride=2, padding=2, act="relu")
    h = conv2d(h, *params["enc2"], cout=fSize * 2, k=5, stride=2, padding=2, act="relu")
    h = conv2d(h, *params["enc3"], cout=fSize * 4, k=5, stride=2, padding=2, act="relu")
    h = conv2d(h, *params["enc4"], cout=C8,        k=5, stride=2, padding=2, act="relu")
    B = h.shape[0]
    # NHWC flatten; the PyTorch NCHW-flatten permutation is folded into enc5_w.
    h_flat = h.reshape(B, -1)
    z = matmul_bias_act(h_flat, *params["enc5"], n_valid=nz, act="none",
                        out_dtype=jnp.float32)
    # ---- decode ----
    d = matmul_bias_act(z, *params["dec1"], n_valid=inSize * inSize * C8,
                        act="relu", out_dtype=jnp.bfloat16)
    d = d.reshape(B, inSize, inSize, C8)         # already NHWC (cols permuted at init)
    d = conv_transpose2d_s2(d, *params["dec2"], cout=fSize * 4, act="relu")
    d = conv_transpose2d_s2(d, *params["dec3"], cout=fSize * 2, act="relu")
    d = conv_transpose2d_s2(d, *params["dec4"], cout=fSize,     act="relu")
    d = conv_transpose2d_s2(d, *params["dec5"], cout=3, act="sigmoid",
                            out_dtype=jnp.float32)
    rec = jnp.transpose(d, (0, 3, 1, 2))         # back to NCHW
    return z, rec


if __name__ == "__main__":
    # small, DAE-consistent config: imSize must be divisible by 2**4
    nz, imSize, fSize, sigma = 8, 16, 2, 0.1
    batch = 2

    key = jax.random.PRNGKey(0)
    k_param, k_x, k_noise = jax.random.split(key, 3)

    raw_params, inSize = init_dae_params(k_param, nz, imSize, fSize)
    params = prepare_dae_params(raw_params, fSize, inSize)   # one-time packing

    x = jax.random.uniform(k_x, (batch, 3, imSize, imSize), jnp.float32)   # NCHW, in [0,1]
    noise = jax.random.normal(k_noise, (batch, 3, imSize, imSize), jnp.float32)

    fwd = jax.jit(functools.partial(dae_forward, sigma=sigma, fSize=fSize,
                                    inSize=inSize, nz=nz))
    z, rec = fwd(params, x, noise)
    jax.block_until_ready((z, rec))

    assert z.shape == (batch, nz)
    assert rec.shape == (batch, 3, imSize, imSize)
    assert bool(jnp.all(jnp.isfinite(z))) and bool(jnp.all(jnp.isfinite(rec)))
    assert bool(jnp.all(rec >= 0.0)) and bool(jnp.all(rec <= 1.0))  # sigmoid output
    print("KERNEL_OK")
</pallas_src>

<mosaic_0001>
module attributes {stable_mosaic.version = 11 : i64} {
  func.func @_matmul_bias_act_kernel(%arg0: i32, %arg1: i32, %arg2: i32, %arg3: memref<64x75xbf16, #tpu.memory_space<vmem>>, %arg4: memref<75x128xbf16, #tpu.memory_space<vmem>>, %arg5: memref<1x128xf32, #tpu.memory_space<vmem>>, %arg6: memref<64x128xbf16, #tpu.memory_space<vmem>>, %arg7: memref<64x128xf32, #tpu.memory_space<vmem>>) attributes {dimension_semantics = [#tpu.dimension_semantics<parallel>, #tpu.dimension_semantics<parallel>, #tpu.dimension_semantics<arbitrary>], iteration_bounds = array<i64: 2, 1, 1>, scalar_prefetch = 0 : i64, scratch_operands = 1 : i64, tpu.core_type = #tpu.core_type<tc>, window_params = [{transform_indices = @transform_0, window_bounds = array<i64: 64, 75>}, {transform_indices = @transform_1, window_bounds = array<i64: 75, 128>}, {transform_indices = @transform_2, window_bounds = array<i64: 1, 128>}, {transform_indices = @transform_3, window_bounds = array<i64: 64, 128>}]} {
    %c0_i32 = arith.constant 0 : i32
    %0 = arith.cmpi eq, %arg2, %c0_i32 : i32
    %1 = arith.extui %0 : i1 to i32
    %c0_i32_0 = arith.constant 0 : i32
    %2 = arith.cmpi ne, %1, %c0_i32_0 : i32
    scf.if %2 {
      %cst_10 = arith.constant 0.000000e+00 : f32
      %12 = vector.broadcast %cst_10 : f32 to vector<64x128xf32>
      %c0_11 = arith.constant 0 : index
      %c0_12 = arith.constant 0 : index
      %13 = vector.load %arg7[%c0_11, %c0_12] : memref<64x128xf32, #tpu.memory_space<vmem>>, vector<64x128xf32>
      tpu.vector_store %arg7[%c0_11, %c0_12], %12 {strides = array<i32>} : memref<64x128xf32, #tpu.memory_space<vmem>>, vector<64x128xf32>,
    } else {
    }
    %c0 = arith.constant 0 : index
    %c0_1 = arith.constant 0 : index
    %3 = vector.load %arg7[%c0, %c0_1] : memref<64x128xf32, #tpu.memory_space<vmem>>, vector<64x128xf32>
    %c0_2 = arith.constant 0 : index
    %c0_3 = arith.constant 0 : index
    %4 = vector.load %arg3[%c0_2, %c0_3] : memref<64x75xbf16, #tpu.memory_space<vmem>>, vector<64x75xbf16>
    %c0_4 = arith.constant 0 : index
    %c0_5 = arith.constant 0 : index
    %5 = vector.load %arg4[%c0_4, %c0_5] : memref<75x128xbf16, #tpu.memory_space<vmem>>, vector<75x128xbf16>
    %cst = arith.constant dense<0.000000e+00> : vector<64x128xf32>
    %6 = tpu.matmul %4, %5, %cst {dimension_numbers = #tpu.dot_dimension_numbers<[1], [0], [0], [1], [0, 0, 1, 1], [], []>} : vector<64x75xbf16>, vector<75x128xbf16>, vector<64x128xf32> -> vector<64x128xf32>
    %7 = arith.addf %3, %6 : vector<64x128xf32>
    %c0_6 = arith.constant 0 : index
    %c0_7 = arith.constant 0 : index
    %8 = vector.load %arg7[%c0_6, %c0_7] : memref<64x128xf32, #tpu.memory_space<vmem>>, vector<64x128xf32>
    tpu.vector_store %arg7[%c0_6, %c0_7], %7 {strides = array<i32>} : memref<64x128xf32, #tpu.memory_space<vmem>>, vector<64x128xf32>,
    %c0_i32_8 = arith.constant 0 : i32
    %9 = arith.cmpi eq, %arg2, %c0_i32_8 : i32
    %10 = arith.extui %9 : i1 to i32
    %c0_i32_9 = arith.constant 0 : i32
    %11 = arith.cmpi ne, %10, %c0_i32_9 : i32
    scf.if %11 {
      %c0_10 = arith.constant 0 : index
      %c0_11 = arith.constant 0 : index
      %12 = vector.load %arg7[%c0_10, %c0_11] : memref<64x128xf32, #tpu.memory_space<vmem>>, vector<64x128xf32>
      %c0_12 = arith.constant 0 : index
      %c0_13 = arith.constant 0 : index
      %13 = vector.load %arg5[%c0_12, %c0_13] : memref<1x128xf32, #tpu.memory_space<vmem>>, vector<1x128xf32>
      %14 = vector.broadcast %13 : vector<1x128xf32> to vector<64x128xf32>
      %15 = arith.addf %12, %14 : vector<64x128xf32>
      %cst_14 = arith.constant 0.000000e+00 : f32
      %16 = vector.broadcast %cst_14 : f32 to vector<64x128xf32>
      %17 = arith.maximumf %15, %16 : vector<64x128xf32>
      %18 = arith.truncf %17 : vector<64x128xf32> to vector<64x128xbf16>
      %c0_15 = arith.constant 0 : index
      %c0_16 = arith.constant 0 : index
      %19 = vector.load %arg6[%c0_15, %c0_16] : memref<64x128xbf16, #tpu.memory_space<vmem>>, vector<64x128xbf16>
      tpu.vector_store %arg6[%c0_15, %c0_16], %18 {strides = array<i32>} : memref<64x128xbf16, #tpu.memory_space<vmem>>, vector<64x128xbf16>,
    } else {
    }
    return
  }
  func.func @transform_0(%arg0: i32, %arg1: i32, %arg2: i32) -> (i32, i32) {
    %c0_i32 = arith.constant 0 : i32
    return %arg0, %arg2 : i32, i32
  }
  func.func @transform_1(%arg0: i32, %arg1: i32, %arg2: i32) -> (i32, i32) {
    %c0_i32 = arith.constant 0 : i32
    return %arg2, %arg1 : i32, i32
  }
  func.func @transform_2(%arg0: i32, %arg1: i32, %arg2: i32) -> (i32, i32) {
    %c0_i32 = arith.constant 0 : i32
    %c0_i32_0 = arith.constant 0 : i32
    return %c0_i32, %arg1 : i32, i32
  }
  func.func @transform_3(%arg0: i32, %arg1: i32, %arg2: i32) -> (i32, i32) {
    %c0_i32 = arith.constant 0 : i32
    return %arg0, %arg1 : i32, i32
  }
}

module attributes {stable_mosaic.version = 11 : i64} {
  func.func @_matmul_bias_act_kernel(%arg0: i32, %arg1: i32, %arg2: i32, %arg3: memref<16x50xbf16, #tpu.memory_space<vmem>>, %arg4: memref<50x128xbf16, #tpu.memory_space<vmem>>, %arg5: memref<1x128xf32, #tpu.memory_space<vmem>>, %arg6: memref<16x128xbf16, #tpu.memory_space<vmem>>, %arg7: memref<16x128xf32, #tpu.memory_space<vmem>>) attributes {dimension_semantics = [#tpu.dimension_semantics<parallel>, #tpu.dimension_semantics<parallel>, #tpu.dimension_semantics<arbitrary>], iteration_bounds = array<i64: 2, 1, 1>, scalar_prefetch = 0 : i64, scratch_operands = 1 : i64, tpu.core_type = #tpu.core_type<tc>, window_params = [{transform_indices = @transform_0, window_bounds = array<i64: 16, 50>}, {transform_indices = @transform_1, window_bounds = array<i64: 50, 128>}, {transform_indices = @transform_2, window_bounds = array<i64: 1, 128>}, {transform_indices = @transform_3, window_bounds = array<i64: 16, 128>}]} {
    %c0_i32 = arith.constant 0 : i32
    %0 = arith.cmpi eq, %arg2, %c0_i32 : i32
    %1 = arith.extui %0 : i1 to i32
    %c0_i32_0 = arith.constant 0 : i32
    %2 = arith.cmpi ne, %1, %c0_i32_0 : i32
    scf.if %2 {
      %cst_10 = arith.constant 0.000000e+00 : f32
      %12 = vector.broadcast %cst_10 : f32 to vector<16x128xf32>
      %c0_11 = arith.constant 0 : index
      %c0_12 = arith.constant 0 : index
      %13 = vector.load %arg7[%c0_11, %c0_12] : memref<16x128xf32, #tpu.memory_space<vmem>>, vector<16x128xf32>
      tpu.vector_store %arg7[%c0_11, %c0_12], %12 {strides = array<i32>} : memref<16x128xf32, #tpu.memory_space<vmem>>, vector<16x128xf32>,
    } else {
    }
    %c0 = arith.constant 0 : index
    %c0_1 = arith.constant 0 : index
    %3 = vector.load %arg7[%c0, %c0_1] : memref<16x128xf32, #tpu.memory_space<vmem>>, vector<16x128xf32>
    %c0_2 = arith.constant 0 : index
    %c0_3 = arith.constant 0 : index
    %4 = vector.load %arg3[%c0_2, %c0_3] : memref<16x50xbf16, #tpu.memory_space<vmem>>, vector<16x50xbf16>
    %c0_4 = arith.constant 0 : index
    %c0_5 = arith.constant 0 : index
    %5 = vector.load %arg4[%c0_4, %c0_5] : memref<50x128xbf16, #tpu.memory_space<vmem>>, vector<50x128xbf16>
    %cst = arith.constant dense<0.000000e+00> : vector<16x128xf32>
    %6 = tpu.matmul %4, %5, %cst {dimension_numbers = #tpu.dot_dimension_numbers<[1], [0], [0], [1], [0, 0, 1, 1], [], []>} : vector<16x50xbf16>, vector<50x128xbf16>, vector<16x128xf32> -> vector<16x128xf32>
    %7 = arith.addf %3, %6 : vector<16x128xf32>
    %c0_6 = arith.constant 0 : index
    %c0_7 = arith.constant 0 : index
    %8 = vector.load %arg7[%c0_6, %c0_7] : memref<16x128xf32, #tpu.memory_space<vmem>>, vector<16x128xf32>
    tpu.vector_store %arg7[%c0_6, %c0_7], %7 {strides = array<i32>} : memref<16x128xf32, #tpu.memory_space<vmem>>, vector<16x128xf32>,
    %c0_i32_8 = arith.constant 0 : i32
    %9 = arith.cmpi eq, %arg2, %c0_i32_8 : i32
    %10 = arith.extui %9 : i1 to i32
    %c0_i32_9 = arith.constant 0 : i32
    %11 = arith.cmpi ne, %10, %c0_i32_9 : i32
    scf.if %11 {
      %c0_10 = arith.constant 0 : index
      %c0_11 = arith.constant 0 : index
      %12 = vector.load %arg7[%c0_10, %c0_11] : memref<16x128xf32, #tpu.memory_space<vmem>>, vector<16x128xf32>
      %c0_12 = arith.constant 0 : index
      %c0_13 = arith.constant 0 : index
      %13 = vector.load %arg5[%c0_12, %c0_13] : memref<1x128xf32, #tpu.memory_space<vmem>>, vector<1x128xf32>
      %14 = vector.broadcast %13 : vector<1x128xf32> to vector<16x128xf32>
      %15 = arith.addf %12, %14 : vector<16x128xf32>
      %cst_14 = arith.constant 0.000000e+00 : f32
      %16 = vector.broadcast %cst_14 : f32 to vector<16x128xf32>
      %17 = arith.maximumf %15, %16 : vector<16x128xf32>
      %18 = arith.truncf %17 : vector<16x128xf32> to vector<16x128xbf16>
      %c0_15 = arith.constant 0 : index
      %c0_16 = arith.constant 0 : index
      %19 = vector.load %arg6[%c0_15, %c0_16] : memref<16x128xbf16, #tpu.memory_space<vmem>>, vector<16x128xbf16>
      tpu.vector_store %arg6[%c0_15, %c0_16], %18 {strides = array<i32>} : memref<16x128xbf16, #tpu.memory_space<vmem>>, vector<16x128xbf16>,
    } else {
    }
    return
  }
  func.func @transform_0(%arg0: i32, %arg1: i32, %arg2: i32) -> (i32, i32) {
    %c0_i32 = arith.constant 0 : i32
    return %arg0, %arg2 : i32, i32
  }
  func.func @transform_1(%arg0: i32, %arg1: i32, %arg2: i32) -> (i32, i32) {
    %c0_i32 = arith.constant 0 : i32
    return %arg2, %arg1 : i32, i32
  }
  func.func @transform_2(%arg0: i32, %arg1: i32, %arg2: i32) -> (i32, i32) {
    %c0_i32 = arith.constant 0 : i32
    %c0_i32_0 = arith.constant 0 : i32
    return %c0_i32, %arg1 : i32, i32
  }
  func.func @transform_3(%arg0: i32, %arg1: i32, %arg2: i32) -> (i32, i32) {
    %c0_i32 = arith.constant 0 : i32
    return %arg0, %arg1 : i32, i32
  }
}

module attributes {stable_mosaic.version = 11 : i64} {
  func.func @_matmul_bias_act_kernel(%arg0: i32, %arg1: i32, %arg2: i32, %arg3: memref<8x100xbf16, #tpu.memory_space<vmem>>, %arg4: memref<100x128xbf16, #tpu.memory_space<vmem>>, %arg5: memref<1x128xf32, #tpu.memory_space<vmem>>, %arg6: memref<8x128xbf16, #tpu.memory_space<vmem>>, %arg7: memref<8x128xf32, #tpu.memory_space<vmem>>) attributes {dimension_semantics = [#tpu.dimension_semantics<parallel>, #tpu.dimension_semantics<parallel>, #tpu.dimension_semantics<arbitrary>], iteration_bounds = array<i64: 1, 1, 1>, scalar_prefetch = 0 : i64, scratch_operands = 1 : i64, tpu.core_type = #tpu.core_type<tc>, window_params = [{transform_indices = @transform_0, window_bounds = array<i64: 8, 100>}, {transform_indices = @transform_1, window_bounds = array<i64: 100, 128>}, {transform_indices = @transform_2, window_bounds = array<i64: 1, 128>}, {transform_indices = @transform_3, window_bounds = array<i64: 8, 128>}]} {
    %c0_i32 = arith.constant 0 : i32
    %0 = arith.cmpi eq, %arg2, %c0_i32 : i32
    %1 = arith.extui %0 : i1 to i32
    %c0_i32_0 = arith.constant 0 : i32
    %2 = arith.cmpi ne, %1, %c0_i32_0 : i32
    scf.if %2 {
      %cst_10 = arith.constant 0.000000e+00 : f32
      %12 = vector.broadcast %cst_10 : f32 to vector<8x128xf32>
      %c0_11 = arith.constant 0 : index
      %c0_12 = arith.constant 0 : index
      %13 = vector.load %arg7[%c0_11, %c0_12] : memref<8x128xf32, #tpu.memory_space<vmem>>, vector<8x128xf32>
      tpu.vector_store %arg7[%c0_11, %c0_12], %12 {strides = array<i32>} : memref<8x128xf32, #tpu.memory_space<vmem>>, vector<8x128xf32>,
    } else {
    }
    %c0 = arith.constant 0 : index
    %c0_1 = arith.constant 0 : index
    %3 = vector.load %arg7[%c0, %c0_1] : memref<8x128xf32, #tpu.memory_space<vmem>>, vector<8x128xf32>
    %c0_2 = arith.constant 0 : index
    %c0_3 = arith.constant 0 : index
    %4 = vector.load %arg3[%c0_2, %c0_3] : memref<8x100xbf16, #tpu.memory_space<vmem>>, vector<8x100xbf16>
    %c0_4 = arith.constant 0 : index
    %c0_5 = arith.constant 0 : index
    %5 = vector.load %arg4[%c0_4, %c0_5] : memref<100x128xbf16, #tpu.memory_space<vmem>>, vector<100x128xbf16>
    %cst = arith.constant dense<0.000000e+00> : vector<8x128xf32>
    %6 = tpu.matmul %4, %5, %cst {dimension_numbers = #tpu.dot_dimension_numbers<[1], [0], [0], [1], [0, 0, 1, 1], [], []>} : vector<8x100xbf16>, vector<100x128xbf16>, vector<8x128xf32> -> vector<8x128xf32>
    %7 = arith.addf %3, %6 : vector<8x128xf32>
    %c0_6 = arith.constant 0 : index
    %c0_7 = arith.constant 0 : index
    %8 = vector.load %arg7[%c0_6, %c0_7] : memref<8x128xf32, #tpu.memory_space<vmem>>, vector<8x128xf32>
    tpu.vector_store %arg7[%c0_6, %c0_7], %7 {strides = array<i32>} : memref<8x128xf32, #tpu.memory_space<vmem>>, vector<8x128xf32>,
    %c0_i32_8 = arith.constant 0 : i32
    %9 = arith.cmpi eq, %arg2, %c0_i32_8 : i32
    %10 = arith.extui %9 : i1 to i32
    %c0_i32_9 = arith.constant 0 : i32
    %11 = arith.cmpi ne, %10, %c0_i32_9 : i32
    scf.if %11 {
      %c0_10 = arith.constant 0 : index
      %c0_11 = arith.constant 0 : index
      %12 = vector.load %arg7[%c0_10, %c0_11] : memref<8x128xf32, #tpu.memory_space<vmem>>, vector<8x128xf32>
      %c0_12 = arith.constant 0 : index
      %c0_13 = arith.constant 0 : index
      %13 = vector.load %arg5[%c0_12, %c0_13] : memref<1x128xf32, #tpu.memory_space<vmem>>, vector<1x128xf32>
      %14 = vector.broadcast %13 : vector<1x128xf32> to vector<8x128xf32>
      %15 = arith.addf %12, %14 : vector<8x128xf32>
      %cst_14 = arith.constant 0.000000e+00 : f32
      %16 = vector.broadcast %cst_14 : f32 to vector<8x128xf32>
      %17 = arith.maximumf %15, %16 : vector<8x128xf32>
      %18 = arith.truncf %17 : vector<8x128xf32> to vector<8x128xbf16>
      %c0_15 = arith.constant 0 : index
      %c0_16 = arith.constant 0 : index
      %19 = vector.load %arg6[%c0_15, %c0_16] : memref<8x128xbf16, #tpu.memory_space<vmem>>, vector<8x128xbf16>
      tpu.vector_store %arg6[%c0_15, %c0_16], %18 {strides = array<i32>} : memref<8x128xbf16, #tpu.memory_space<vmem>>, vector<8x128xbf16>,
    } else {
    }
    return
  }
  func.func @transform_0(%arg0: i32, %arg1: i32, %arg2: i32) -> (i32, i32) {
    %c0_i32 = arith.constant 0 : i32
    return %arg0, %arg2 : i32, i32
  }
  func.func @transform_1(%arg0: i32, %arg1: i32, %arg2: i32) -> (i32, i32) {
    %c0_i32 = arith.constant 0 : i32
    return %arg2, %arg1 : i32, i32
  }
  func.func @transform_2(%arg0: i32, %arg1: i32, %arg2: i32) -> (i32, i32) {
    %c0_i32 = arith.constant 0 : i32
    %c0_i32_0 = arith.constant 0 : i32
    return %c0_i32, %arg1 : i32, i32
  }
  func.func @transform_3(%arg0: i32, %arg1: i32, %arg2: i32) -> (i32, i32) {
    %c0_i32 = arith.constant 0 : i32
    return %arg0, %arg1 : i32, i32
  }
}

module attributes {stable_mosaic.version = 11 : i64} {
  func.func @_matmul_bias_act_kernel(%arg0: i32, %arg1: i32, %arg2: i32, %arg3: memref<8x200xbf16, #tpu.memory_space<vmem>>, %arg4: memref<200x128xbf16, #tpu.memory_space<vmem>>, %arg5: memref<1x128xf32, #tpu.memory_space<vmem>>, %arg6: memref<8x128xbf16, #tpu.memory_space<vmem>>, %arg7: memref<8x128xf32, #tpu.memory_space<vmem>>) attributes {dimension_semantics = [#tpu.dimension_semantics<parallel>, #tpu.dimension_semantics<parallel>, #tpu.dimension_semantics<arbitrary>], iteration_bounds = array<i64: 1, 1, 1>, scalar_prefetch = 0 : i64, scratch_operands = 1 : i64, tpu.core_type = #tpu.core_type<tc>, window_params = [{transform_indices = @transform_0, window_bounds = array<i64: 8, 200>}, {transform_indices = @transform_1, window_bounds = array<i64: 200, 128>}, {transform_indices = @transform_2, window_bounds = array<i64: 1, 128>}, {transform_indices = @transform_3, window_bounds = array<i64: 8, 128>}]} {
    %c0_i32 = arith.constant 0 : i32
    %0 = arith.cmpi eq, %arg2, %c0_i32 : i32
    %1 = arith.extui %0 : i1 to i32
    %c0_i32_0 = arith.constant 0 : i32
    %2 = arith.cmpi ne, %1, %c0_i32_0 : i32
    scf.if %2 {
      %cst_10 = arith.constant 0.000000e+00 : f32
      %12 = vector.broadcast %cst_10 : f32 to vector<8x128xf32>
      %c0_11 = arith.constant 0 : index
      %c0_12 = arith.constant 0 : index
      %13 = vector.load %arg7[%c0_11, %c0_12] : memref<8x128xf32, #tpu.memory_space<vmem>>, vector<8x128xf32>
      tpu.vector_store %arg7[%c0_11, %c0_12], %12 {strides = array<i32>} : memref<8x128xf32, #tpu.memory_space<vmem>>, vector<8x128xf32>,
    } else {
    }
    %c0 = arith.constant 0 : index
    %c0_1 = arith.constant 0 : index
    %3 = vector.load %arg7[%c0, %c0_1] : memref<8x128xf32, #tpu.memory_space<vmem>>, vector<8x128xf32>
    %c0_2 = arith.constant 0 : index
    %c0_3 = arith.constant 0 : index
    %4 = vector.load %arg3[%c0_2, %c0_3] : memref<8x200xbf16, #tpu.memory_space<vmem>>, vector<8x200xbf16>
    %c0_4 = arith.constant 0 : index
    %c0_5 = arith.constant 0 : index
    %5 = vector.load %arg4[%c0_4, %c0_5] : memref<200x128xbf16, #tpu.memory_space<vmem>>, vector<200x128xbf16>
    %cst = arith.constant dense<0.000000e+00> : vector<8x128xf32>
    %6 = tpu.matmul %4, %5, %cst {dimension_numbers = #tpu.dot_dimension_numbers<[1], [0], [0], [1], [0, 0, 1, 1], [], []>} : vector<8x200xbf16>, vector<200x128xbf16>, vector<8x128xf32> -> vector<8x128xf32>
    %7 = arith.addf %3, %6 : vector<8x128xf32>
    %c0_6 = arith.constant 0 : index
    %c0_7 = arith.constant 0 : index
    %8 = vector.load %arg7[%c0_6, %c0_7] : memref<8x128xf32, #tpu.memory_space<vmem>>, vector<8x128xf32>
    tpu.vector_store %arg7[%c0_6, %c0_7], %7 {strides = array<i32>} : memref<8x128xf32, #tpu.memory_space<vmem>>, vector<8x128xf32>,
    %c0_i32_8 = arith.constant 0 : i32
    %9 = arith.cmpi eq, %arg2, %c0_i32_8 : i32
    %10 = arith.extui %9 : i1 to i32
    %c0_i32_9 = arith.constant 0 : i32
    %11 = arith.cmpi ne, %10, %c0_i32_9 : i32
    scf.if %11 {
      %c0_10 = arith.constant 0 : index
      %c0_11 = arith.constant 0 : index
      %12 = vector.load %arg7[%c0_10, %c0_11] : memref<8x128xf32, #tpu.memory_space<vmem>>, vector<8x128xf32>
      %c0_12 = arith.constant 0 : index
      %c0_13 = arith.constant 0 : index
      %13 = vector.load %arg5[%c0_12, %c0_13] : memref<1x128xf32, #tpu.memory_space<vmem>>, vector<1x128xf32>
      %14 = vector.broadcast %13 : vector<1x128xf32> to vector<8x128xf32>
      %15 = arith.addf %12, %14 : vector<8x128xf32>
      %cst_14 = arith.constant 0.000000e+00 : f32
      %16 = vector.broadcast %cst_14 : f32 to vector<8x128xf32>
      %17 = arith.maximumf %15, %16 : vector<8x128xf32>
      %18 = arith.truncf %17 : vector<8x128xf32> to vector<8x128xbf16>
      %c0_15 = arith.constant 0 : index
      %c0_16 = arith.constant 0 : index
      %19 = vector.load %arg6[%c0_15, %c0_16] : memref<8x128xbf16, #tpu.memory_space<vmem>>, vector<8x128xbf16>
      tpu.vector_store %arg6[%c0_15, %c0_16], %18 {strides = array<i32>} : memref<8x128xbf16, #tpu.memory_space<vmem>>, vector<8x128xbf16>,
    } else {
    }
    return
  }
  func.func @transform_0(%arg0: i32, %arg1: i32, %arg2: i32) -> (i32, i32) {
    %c0_i32 = arith.constant 0 : i32
    return %arg0, %arg2 : i32, i32
  }
  func.func @transform_1(%arg0: i32, %arg1: i32, %arg2: i32) -> (i32, i32) {
    %c0_i32 = arith.constant 0 : i32
    return %arg2, %arg1 : i32, i32
  }
  func.func @transform_2(%arg0: i32, %arg1: i32, %arg2: i32) -> (i32, i32) {
    %c0_i32 = arith.constant 0 : i32
    %c0_i32_0 = arith.constant 0 : i32
    return %c0_i32, %arg1 : i32, i32
  }
  func.func @transform_3(%arg0: i32, %arg1: i32, %arg2: i32) -> (i32, i32) {
    %c0_i32 = arith.constant 0 : i32
    return %arg0, %arg1 : i32, i32
  }
}

module attributes {stable_mosaic.version = 11 : i64} {
  func.func @_matmul_bias_act_kernel(%arg0: i32, %arg1: i32, %arg2: i32, %arg3: memref<8x64xbf16, #tpu.memory_space<vmem>>, %arg4: memref<64x128xbf16, #tpu.memory_space<vmem>>, %arg5: memref<1x128xf32, #tpu.memory_space<vmem>>, %arg6: memref<8x128xbf16, #tpu.memory_space<vmem>>, %arg7: memref<8x128xf32, #tpu.memory_space<vmem>>) attributes {dimension_semantics = [#tpu.dimension_semantics<parallel>, #tpu.dimension_semantics<parallel>, #tpu.dimension_semantics<arbitrary>], iteration_bounds = array<i64: 1, 1, 1>, scalar_prefetch = 0 : i64, scratch_operands = 1 : i64, tpu.core_type = #tpu.core_type<tc>, window_params = [{transform_indices = @transform_0, window_bounds = array<i64: 8, 64>}, {transform_indices = @transform_1, window_bounds = array<i64: 64, 128>}, {transform_indices = @transform_2, window_bounds = array<i64: 1, 128>}, {transform_indices = @transform_3, window_bounds = array<i64: 8, 128>}]} {
    %c0_i32 = arith.constant 0 : i32
    %0 = arith.cmpi eq, %arg2, %c0_i32 : i32
    %1 = arith.extui %0 : i1 to i32
    %c0_i32_0 = arith.constant 0 : i32
    %2 = arith.cmpi ne, %1, %c0_i32_0 : i32
    scf.if %2 {
      %cst_10 = arith.constant 0.000000e+00 : f32
      %12 = vector.broadcast %cst_10 : f32 to vector<8x128xf32>
      %c0_11 = arith.constant 0 : index
      %c0_12 = arith.constant 0 : index
      %13 = vector.load %arg7[%c0_11, %c0_12] : memref<8x128xf32, #tpu.memory_space<vmem>>, vector<8x128xf32>
      tpu.vector_store %arg7[%c0_11, %c0_12], %12 {strides = array<i32>} : memref<8x128xf32, #tpu.memory_space<vmem>>, vector<8x128xf32>,
    } else {
    }
    %c0 = arith.constant 0 : index
    %c0_1 = arith.constant 0 : index
    %3 = vector.load %arg7[%c0, %c0_1] : memref<8x128xf32, #tpu.memory_space<vmem>>, vector<8x128xf32>
    %c0_2 = arith.constant 0 : index
    %c0_3 = arith.constant 0 : index
    %4 = vector.load %arg3[%c0_2, %c0_3] : memref<8x64xbf16, #tpu.memory_space<vmem>>, vector<8x64xbf16>
    %c0_4 = arith.constant 0 : index
    %c0_5 = arith.constant 0 : index
    %5 = vector.load %arg4[%c0_4, %c0_5] : memref<64x128xbf16, #tpu.memory_space<vmem>>, vector<64x128xbf16>
    %cst = arith.constant dense<0.000000e+00> : vector<8x128xf32>
    %6 = tpu.matmul %4, %5, %cst {dimension_numbers = #tpu.dot_dimension_numbers<[1], [0], [0], [1], [0, 0, 1, 1], [], []>} : vector<8x64xbf16>, vector<64x128xbf16>, vector<8x128xf32> -> vector<8x128xf32>
    %7 = arith.addf %3, %6 : vector<8x128xf32>
    %c0_6 = arith.constant 0 : index
    %c0_7 = arith.constant 0 : index
    %8 = vector.load %arg7[%c0_6, %c0_7] : memref<8x128xf32, #tpu.memory_space<vmem>>, vector<8x128xf32>
    tpu.vector_store %arg7[%c0_6, %c0_7], %7 {strides = array<i32>} : memref<8x128xf32, #tpu.memory_space<vmem>>, vector<8x128xf32>,
    %c0_i32_8 = arith.constant 0 : i32
    %9 = arith.cmpi eq, %arg2, %c0_i32_8 : i32
    %10 = arith.extui %9 : i1 to i32
    %c0_i32_9 = arith.constant 0 : i32
    %11 = arith.cmpi ne, %10, %c0_i32_9 : i32
    scf.if %11 {
      %c0_10 = arith.constant 0 : index
      %c0_11 = arith.constant 0 : index
      %12 = vector.load %arg7[%c0_10, %c0_11] : memref<8x128xf32, #tpu.memory_space<vmem>>, vector<8x128xf32>
      %c0_12 = arith.constant 0 : index
      %c0_13 = arith.constant 0 : index
      %13 = vector.load %arg5[%c0_12, %c0_13] : memref<1x128xf32, #tpu.memory_space<vmem>>, vector<1x128xf32>
      %14 = vector.broadcast %13 : vector<1x128xf32> to vector<8x128xf32>
      %15 = arith.addf %12, %14 : vector<8x128xf32>
      %cst_14 = arith.constant 0.000000e+00 : f32
      %16 = vector.broadcast %cst_14 : f32 to vector<8x128xf32>
      %17 = arith.maximumf %15, %16 : vector<8x128xf32>
      %18 = arith.truncf %17 : vector<8x128xf32> to vector<8x128xbf16>
      %c0_15 = arith.constant 0 : index
      %c0_16 = arith.constant 0 : index
      %19 = vector.load %arg6[%c0_15, %c0_16] : memref<8x128xbf16, #tpu.memory_space<vmem>>, vector<8x128xbf16>
      tpu.vector_store %arg6[%c0_15, %c0_16], %18 {strides = array<i32>} : memref<8x128xbf16, #tpu.memory_space<vmem>>, vector<8x128xbf16>,
    } else {
    }
    return
  }
  func.func @transform_0(%arg0: i32, %arg1: i32, %arg2: i32) -> (i32, i32) {
    %c0_i32 = arith.constant 0 : i32
    return %arg0, %arg2 : i32, i32
  }
  func.func @transform_1(%arg0: i32, %arg1: i32, %arg2: i32) -> (i32, i32) {
    %c0_i32 = arith.constant 0 : i32
    return %arg2, %arg1 : i32, i32
  }
  func.func @transform_2(%arg0: i32, %arg1: i32, %arg2: i32) -> (i32, i32) {
    %c0_i32 = arith.constant 0 : i32
    %c0_i32_0 = arith.constant 0 : i32
    return %c0_i32, %arg1 : i32, i32
  }
  func.func @transform_3(%arg0: i32, %arg1: i32, %arg2: i32) -> (i32, i32) {
    %c0_i32 = arith.constant 0 : i32
    return %arg0, %arg1 : i32, i32
  }
}

module attributes {stable_mosaic.version = 11 : i64} {
  func.func @_matmul_bias_act_kernel(%arg0: i32, %arg1: i32, %arg2: i32, %arg3: memref<8x16xbf16, #tpu.memory_space<vmem>>, %arg4: memref<16x128xbf16, #tpu.memory_space<vmem>>, %arg5: memref<1x128xf32, #tpu.memory_space<vmem>>, %arg6: memref<8x128xf32, #tpu.memory_space<vmem>>, %arg7: memref<8x128xf32, #tpu.memory_space<vmem>>) attributes {dimension_semantics = [#tpu.dimension_semantics<parallel>, #tpu.dimension_semantics<parallel>, #tpu.dimension_semantics<arbitrary>], iteration_bounds = array<i64: 1, 1, 1>, scalar_prefetch = 0 : i64, scratch_operands = 1 : i64, tpu.core_type = #tpu.core_type<tc>, window_params = [{transform_indices = @transform_0, window_bounds = array<i64: 8, 16>}, {transform_indices = @transform_1, window_bounds = array<i64: 16, 128>}, {transform_indices = @transform_2, window_bounds = array<i64: 1, 128>}, {transform_indices = @transform_3, window_bounds = array<i64: 8, 128>}]} {
    %c0_i32 = arith.constant 0 : i32
    %0 = arith.cmpi eq, %arg2, %c0_i32 : i32
    %1 = arith.extui %0 : i1 to i32
    %c0_i32_0 = arith.constant 0 : i32
    %2 = arith.cmpi ne, %1, %c0_i32_0 : i32
    scf.if %2 {
      %cst_10 = arith.constant 0.000000e+00 : f32
      %12 = vector.broadcast %cst_10 : f32 to vector<8x128xf32>
      %c0_11 = arith.constant 0 : index
      %c0_12 = arith.constant 0 : index
      %13 = vector.load %arg7[%c0_11, %c0_12] : memref<8x128xf32, #tpu.memory_space<vmem>>, vector<8x128xf32>
      tpu.vector_store %arg7[%c0_11, %c0_12], %12 {strides = array<i32>} : memref<8x128xf32, #tpu.memory_space<vmem>>, vector<8x128xf32>,
    } else {
    }
    %c0 = arith.constant 0 : index
    %c0_1 = arith.constant 0 : index
    %3 = vector.load %arg7[%c0, %c0_1] : memref<8x128xf32, #tpu.memory_space<vmem>>, vector<8x128xf32>
    %c0_2 = arith.constant 0 : index
    %c0_3 = arith.constant 0 : index
    %4 = vector.load %arg3[%c0_2, %c0_3] : memref<8x16xbf16, #tpu.memory_space<vmem>>, vector<8x16xbf16>
    %c0_4 = arith.constant 0 : index
    %c0_5 = arith.constant 0 : index
    %5 = vector.load %arg4[%c0_4, %c0_5] : memref<16x128xbf16, #tpu.memory_space<vmem>>, vector<16x128xbf16>
    %cst = arith.constant dense<0.000000e+00> : vector<8x128xf32>
    %6 = tpu.matmul %4, %5, %cst {dimension_numbers = #tpu.dot_dimension_numbers<[1], [0], [0], [1], [0, 0, 1, 1], [], []>} : vector<8x16xbf16>, vector<16x128xbf16>, vector<8x128xf32> -> vector<8x128xf32>
    %7 = arith.addf %3, %6 : vector<8x128xf32>
    %c0_6 = arith.constant 0 : index
    %c0_7 = arith.constant 0 : index
    %8 = vector.load %arg7[%c0_6, %c0_7] : memref<8x128xf32, #tpu.memory_space<vmem>>, vector<8x128xf32>
    tpu.vector_store %arg7[%c0_6, %c0_7], %7 {strides = array<i32>} : memref<8x128xf32, #tpu.memory_space<vmem>>, vector<8x128xf32>,
    %c0_i32_8 = arith.constant 0 : i32
    %9 = arith.cmpi eq, %arg2, %c0_i32_8 : i32
    %10 = arith.extui %9 : i1 to i32
    %c0_i32_9 = arith.constant 0 : i32
    %11 = arith.cmpi ne, %10, %c0_i32_9 : i32
    scf.if %11 {
      %c0_10 = arith.constant 0 : index
      %c0_11 = arith.constant 0 : index
      %12 = vector.load %arg7[%c0_10, %c0_11] : memref<8x128xf32, #tpu.memory_space<vmem>>, vector<8x128xf32>
      %c0_12 = arith.constant 0 : index
      %c0_13 = arith.constant 0 : index
      %13 = vector.load %arg5[%c0_12, %c0_13] : memref<1x128xf32, #tpu.memory_space<vmem>>, vector<1x128xf32>
      %14 = vector.broadcast %13 : vector<1x128xf32> to vector<8x128xf32>
      %15 = arith.addf %12, %14 : vector<8x128xf32>
      %c0_14 = arith.constant 0 : index
      %c0_15 = arith.constant 0 : index
      %16 = vector.load %arg6[%c0_14, %c0_15] : memref<8x128xf32, #tpu.memory_space<vmem>>, vector<8x128xf32>
      tpu.vector_store %arg6[%c0_14, %c0_15], %15 {strides = array<i32>} : memref<8x128xf32, #tpu.memory_space<vmem>>, vector<8x128xf32>,
    } else {
    }
    return
  }
  func.func @transform_0(%arg0: i32, %arg1: i32, %arg2: i32) -> (i32, i32) {
    %c0_i32 = arith.constant 0 : i32
    return %arg0, %arg2 : i32, i32
  }
  func.func @transform_1(%arg0: i32, %arg1: i32, %arg2: i32) -> (i32, i32) {
    %c0_i32 = arith.constant 0 : i32
    return %arg2, %arg1 : i32, i32
  }
  func.func @transform_2(%arg0: i32, %arg1: i32, %arg2: i32) -> (i32, i32) {
    %c0_i32 = arith.constant 0 : i32
    %c0_i32_0 = arith.constant 0 : i32
    return %c0_i32, %arg1 : i32, i32
  }
  func.func @transform_3(%arg0: i32, %arg1: i32, %arg2: i32) -> (i32, i32) {
    %c0_i32 = arith.constant 0 : i32
    return %arg0, %arg1 : i32, i32
  }
}

module attributes {stable_mosaic.version = 11 : i64} {
  func.func @_matmul_bias_act_kernel(%arg0: i32, %arg1: i32, %arg2: i32, %arg3: memref<8x8xbf16, #tpu.memory_space<vmem>>, %arg4: memref<8x128xbf16, #tpu.memory_space<vmem>>, %arg5: memref<1x128xf32, #tpu.memory_space<vmem>>, %arg6: memref<8x128xbf16, #tpu.memory_space<vmem>>, %arg7: memref<8x128xf32, #tpu.memory_space<vmem>>) attributes {dimension_semantics = [#tpu.dimension_semantics<parallel>, #tpu.dimension_semantics<parallel>, #tpu.dimension_semantics<arbitrary>], iteration_bounds = array<i64: 1, 1, 1>, scalar_prefetch = 0 : i64, scratch_operands = 1 : i64, tpu.core_type = #tpu.core_type<tc>, window_params = [{transform_indices = @transform_0, window_bounds = array<i64: 8, 8>}, {transform_indices = @transform_1, window_bounds = array<i64: 8, 128>}, {transform_indices = @transform_2, window_bounds = array<i64: 1, 128>}, {transform_indices = @transform_3, window_bounds = array<i64: 8, 128>}]} {
    %c0_i32 = arith.constant 0 : i32
    %0 = arith.cmpi eq, %arg2, %c0_i32 : i32
    %1 = arith.extui %0 : i1 to i32
    %c0_i32_0 = arith.constant 0 : i32
    %2 = arith.cmpi ne, %1, %c0_i32_0 : i32
    scf.if %2 {
      %cst_10 = arith.constant 0.000000e+00 : f32
      %12 = vector.broadcast %cst_10 : f32 to vector<8x128xf32>
      %c0_11 = arith.constant 0 : index
      %c0_12 = arith.constant 0 : index
      %13 = vector.load %arg7[%c0_11, %c0_12] : memref<8x128xf32, #tpu.memory_space<vmem>>, vector<8x128xf32>
      tpu.vector_store %arg7[%c0_11, %c0_12], %12 {strides = array<i32>} : memref<8x128xf32, #tpu.memory_space<vmem>>, vector<8x128xf32>,
    } else {
    }
    %c0 = arith.constant 0 : index
    %c0_1 = arith.constant 0 : index
    %3 = vector.load %arg7[%c0, %c0_1] : memref<8x128xf32, #tpu.memory_space<vmem>>, vector<8x128xf32>
    %c0_2 = arith.constant 0 : index
    %c0_3 = arith.constant 0 : index
    %4 = vector.load %arg3[%c0_2, %c0_3] : memref<8x8xbf16, #tpu.memory_space<vmem>>, vector<8x8xbf16>
    %c0_4 = arith.constant 0 : index
    %c0_5 = arith.constant 0 : index
    %5 = vector.load %arg4[%c0_4, %c0_5] : memref<8x128xbf16, #tpu.memory_space<vmem>>, vector<8x128xbf16>
    %cst = arith.constant dense<0.000000e+00> : vector<8x128xf32>
    %6 = tpu.matmul %4, %5, %cst {dimension_numbers = #tpu.dot_dimension_numbers<[1], [0], [0], [1], [0, 0, 1, 1], [], []>} : vector<8x8xbf16>, vector<8x128xbf16>, vector<8x128xf32> -> vector<8x128xf32>
    %7 = arith.addf %3, %6 : vector<8x128xf32>
    %c0_6 = arith.constant 0 : index
    %c0_7 = arith.constant 0 : index
    %8 = vector.load %arg7[%c0_6, %c0_7] : memref<8x128xf32, #tpu.memory_space<vmem>>, vector<8x128xf32>
    tpu.vector_store %arg7[%c0_6, %c0_7], %7 {strides = array<i32>} : memref<8x128xf32, #tpu.memory_space<vmem>>, vector<8x128xf32>,
    %c0_i32_8 = arith.constant 0 : i32
    %9 = arith.cmpi eq, %arg2, %c0_i32_8 : i32
    %10 = arith.extui %9 : i1 to i32
    %c0_i32_9 = arith.constant 0 : i32
    %11 = arith.cmpi ne, %10, %c0_i32_9 : i32
    scf.if %11 {
      %c0_10 = arith.constant 0 : index
      %c0_11 = arith.constant 0 : index
      %12 = vector.load %arg7[%c0_10, %c0_11] : memref<8x128xf32, #tpu.memory_space<vmem>>, vector<8x128xf32>
      %c0_12 = arith.constant 0 : index
      %c0_13 = arith.constant 0 : index
      %13 = vector.load %arg5[%c0_12, %c0_13] : memref<1x128xf32, #tpu.memory_space<vmem>>, vector<1x128xf32>
      %14 = vector.broadcast %13 : vector<1x128xf32> to vector<8x128xf32>
      %15 = arith.addf %12, %14 : vector<8x128xf32>
      %cst_14 = arith.constant 0.000000e+00 : f32
      %16 = vector.broadcast %cst_14 : f32 to vector<8x128xf32>
      %17 = arith.maximumf %15, %16 : vector<8x128xf32>
      %18 = arith.truncf %17 : vector<8x128xf32> to vector<8x128xbf16>
      %c0_15 = arith.constant 0 : index
      %c0_16 = arith.constant 0 : index
      %19 = vector.load %arg6[%c0_15, %c0_16] : memref<8x128xbf16, #tpu.memory_space<vmem>>, vector<8x128xbf16>
      tpu.vector_store %arg6[%c0_15, %c0_16], %18 {strides = array<i32>} : memref<8x128xbf16, #tpu.memory_space<vmem>>, vector<8x128xbf16>,
    } else {
    }
    return
  }
  func.func @transform_0(%arg0: i32, %arg1: i32, %arg2: i32) -> (i32, i32) {
    %c0_i32 = arith.constant 0 : i32
    return %arg0, %arg2 : i32, i32
  }
  func.func @transform_1(%arg0: i32, %arg1: i32, %arg2: i32) -> (i32, i32) {
    %c0_i32 = arith.constant 0 : i32
    return %arg2, %arg1 : i32, i32
  }
  func.func @transform_2(%arg0: i32, %arg1: i32, %arg2: i32) -> (i32, i32) {
    %c0_i32 = arith.constant 0 : i32
    %c0_i32_0 = arith.constant 0 : i32
    return %c0_i32, %arg1 : i32, i32
  }
  func.func @transform_3(%arg0: i32, %arg1: i32, %arg2: i32) -> (i32, i32) {
    %c0_i32 = arith.constant 0 : i32
    return %arg0, %arg1 : i32, i32
  }
}

module attributes {stable_mosaic.version = 11 : i64} {
  func.func @_matmul_bias_act_kernel(%arg0: i32, %arg1: i32, %arg2: i32, %arg3: memref<8x32xbf16, #tpu.memory_space<vmem>>, %arg4: memref<32x128xbf16, #tpu.memory_space<vmem>>, %arg5: memref<1x128xf32, #tpu.memory_space<vmem>>, %arg6: memref<8x128xbf16, #tpu.memory_space<vmem>>, %arg7: memref<8x128xf32, #tpu.memory_space<vmem>>) attributes {dimension_semantics = [#tpu.dimension_semantics<parallel>, #tpu.dimension_semantics<parallel>, #tpu.dimension_semantics<arbitrary>], iteration_bounds = array<i64: 1, 1, 1>, scalar_prefetch = 0 : i64, scratch_operands = 1 : i64, tpu.core_type = #tpu.core_type<tc>, window_params = [{transform_indices = @transform_0, window_bounds = array<i64: 8, 32>}, {transform_indices = @transform_1, window_bounds = array<i64: 32, 128>}, {transform_indices = @transform_2, window_bounds = array<i64: 1, 128>}, {transform_indices = @transform_3, window_bounds = array<i64: 8, 128>}]} {
    %c0_i32 = arith.constant 0 : i32
    %0 = arith.cmpi eq, %arg2, %c0_i32 : i32
    %1 = arith.extui %0 : i1 to i32
    %c0_i32_0 = arith.constant 0 : i32
    %2 = arith.cmpi ne, %1, %c0_i32_0 : i32
    scf.if %2 {
      %cst_10 = arith.constant 0.000000e+00 : f32
      %12 = vector.broadcast %cst_10 : f32 to vector<8x128xf32>
      %c0_11 = arith.constant 0 : index
      %c0_12 = arith.constant 0 : index
      %13 = vector.load %arg7[%c0_11, %c0_12] : memref<8x128xf32, #tpu.memory_space<vmem>>, vector<8x128xf32>
      tpu.vector_store %arg7[%c0_11, %c0_12], %12 {strides = array<i32>} : memref<8x128xf32, #tpu.memory_space<vmem>>, vector<8x128xf32>,
    } else {
    }
    %c0 = arith.constant 0 : index
    %c0_1 = arith.constant 0 : index
    %3 = vector.load %arg7[%c0, %c0_1] : memref<8x128xf32, #tpu.memory_space<vmem>>, vector<8x128xf32>
    %c0_2 = arith.constant 0 : index
    %c0_3 = arith.constant 0 : index
    %4 = vector.load %arg3[%c0_2, %c0_3] : memref<8x32xbf16, #tpu.memory_space<vmem>>, vector<8x32xbf16>
    %c0_4 = arith.constant 0 : index
    %c0_5 = arith.constant 0 : index
    %5 = vector.load %arg4[%c0_4, %c0_5] : memref<32x128xbf16, #tpu.memory_space<vmem>>, vector<32x128xbf16>
    %cst = arith.constant dense<0.000000e+00> : vector<8x128xf32>
    %6 = tpu.matmul %4, %5, %cst {dimension_numbers = #tpu.dot_dimension_numbers<[1], [0], [0], [1], [0, 0, 1, 1], [], []>} : vector<8x32xbf16>, vector<32x128xbf16>, vector<8x128xf32> -> vector<8x128xf32>
    %7 = arith.addf %3, %6 : vector<8x128xf32>
    %c0_6 = arith.constant 0 : index
    %c0_7 = arith.constant 0 : index
    %8 = vector.load %arg7[%c0_6, %c0_7] : memref<8x128xf32, #tpu.memory_space<vmem>>, vector<8x128xf32>
    tpu.vector_store %arg7[%c0_6, %c0_7], %7 {strides = array<i32>} : memref<8x128xf32, #tpu.memory_space<vmem>>, vector<8x128xf32>,
    %c0_i32_8 = arith.constant 0 : i32
    %9 = arith.cmpi eq, %arg2, %c0_i32_8 : i32
    %10 = arith.extui %9 : i1 to i32
    %c0_i32_9 = arith.constant 0 : i32
    %11 = arith.cmpi ne, %10, %c0_i32_9 : i32
    scf.if %11 {
      %c0_10 = arith.constant 0 : index
      %c0_11 = arith.constant 0 : index
      %12 = vector.load %arg7[%c0_10, %c0_11] : memref<8x128xf32, #tpu.memory_space<vmem>>, vector<8x128xf32>
      %c0_12 = arith.constant 0 : index
      %c0_13 = arith.constant 0 : index
      %13 = vector.load %arg5[%c0_12, %c0_13] : memref<1x128xf32, #tpu.memory_space<vmem>>, vector<1x128xf32>
      %14 = vector.broadcast %13 : vector<1x128xf32> to vector<8x128xf32>
      %15 = arith.addf %12, %14 : vector<8x128xf32>
      %cst_14 = arith.constant 0.000000e+00 : f32
      %16 = vector.broadcast %cst_14 : f32 to vector<8x128xf32>
      %17 = arith.maximumf %15, %16 : vector<8x128xf32>
      %18 = arith.truncf %17 : vector<8x128xf32> to vector<8x128xbf16>
      %c0_15 = arith.constant 0 : index
      %c0_16 = arith.constant 0 : index
      %19 = vector.load %arg6[%c0_15, %c0_16] : memref<8x128xbf16, #tpu.memory_space<vmem>>, vector<8x128xbf16>
      tpu.vector_store %arg6[%c0_15, %c0_16], %18 {strides = array<i32>} : memref<8x128xbf16, #tpu.memory_space<vmem>>, vector<8x128xbf16>,
    } else {
    }
    return
  }
  func.func @transform_0(%arg0: i32, %arg1: i32, %arg2: i32) -> (i32, i32) {
    %c0_i32 = arith.constant 0 : i32
    return %arg0, %arg2 : i32, i32
  }
  func.func @transform_1(%arg0: i32, %arg1: i32, %arg2: i32) -> (i32, i32) {
    %c0_i32 = arith.constant 0 : i32
    return %arg2, %arg1 : i32, i32
  }
  func.func @transform_2(%arg0: i32, %arg1: i32, %arg2: i32) -> (i32, i32) {
    %c0_i32 = arith.constant 0 : i32
    %c0_i32_0 = arith.constant 0 : i32
    return %c0_i32, %arg1 : i32, i32
  }
  func.func @transform_3(%arg0: i32, %arg1: i32, %arg2: i32) -> (i32, i32) {
    %c0_i32 = arith.constant 0 : i32
    return %arg0, %arg1 : i32, i32
  }
}

module attributes {stable_mosaic.version = 11 : i64} {
  func.func @_matmul_bias_act_kernel(%arg0: i32, %arg1: i32, %arg2: i32, %arg3: memref<16x16xbf16, #tpu.memory_space<vmem>>, %arg4: memref<16x128xbf16, #tpu.memory_space<vmem>>, %arg5: memref<1x128xf32, #tpu.memory_space<vmem>>, %arg6: memref<16x128xbf16, #tpu.memory_space<vmem>>, %arg7: memref<16x128xf32, #tpu.memory_space<vmem>>) attributes {dimension_semantics = [#tpu.dimension_semantics<parallel>, #tpu.dimension_semantics<parallel>, #tpu.dimension_semantics<arbitrary>], iteration_bounds = array<i64: 2, 1, 1>, scalar_prefetch = 0 : i64, scratch_operands = 1 : i64, tpu.core_type = #tpu.core_type<tc>, window_params = [{transform_indices = @transform_0, window_bounds = array<i64: 16, 16>}, {transform_indices = @transform_1, window_bounds = array<i64: 16, 128>}, {transform_indices = @transform_2, window_bounds = array<i64: 1, 128>}, {transform_indices = @transform_3, window_bounds = array<i64: 16, 128>}]} {
    %c0_i32 = arith.constant 0 : i32
    %0 = arith.cmpi eq, %arg2, %c0_i32 : i32
    %1 = arith.extui %0 : i1 to i32
    %c0_i32_0 = arith.constant 0 : i32
    %2 = arith.cmpi ne, %1, %c0_i32_0 : i32
    scf.if %2 {
      %cst_10 = arith.constant 0.000000e+00 : f32
      %12 = vector.broadcast %cst_10 : f32 to vector<16x128xf32>
      %c0_11 = arith.constant 0 : index
      %c0_12 = arith.constant 0 : index
      %13 = vector.load %arg7[%c0_11, %c0_12] : memref<16x128xf32, #tpu.memory_space<vmem>>, vector<16x128xf32>
      tpu.vector_store %arg7[%c0_11, %c0_12], %12 {strides = array<i32>} : memref<16x128xf32, #tpu.memory_space<vmem>>, vector<16x128xf32>,
    } else {
    }
    %c0 = arith.constant 0 : index
    %c0_1 = arith.constant 0 : index
    %3 = vector.load %arg7[%c0, %c0_1] : memref<16x128xf32, #tpu.memory_space<vmem>>, vector<16x128xf32>
    %c0_2 = arith.constant 0 : index
    %c0_3 = arith.constant 0 : index
    %4 = vector.load %arg3[%c0_2, %c0_3] : memref<16x16xbf16, #tpu.memory_space<vmem>>, vector<16x16xbf16>
    %c0_4 = arith.constant 0 : index
    %c0_5 = arith.constant 0 : index
    %5 = vector.load %arg4[%c0_4, %c0_5] : memref<16x128xbf16, #tpu.memory_space<vmem>>, vector<16x128xbf16>
    %cst = arith.constant dense<0.000000e+00> : vector<16x128xf32>
    %6 = tpu.matmul %4, %5, %cst {dimension_numbers = #tpu.dot_dimension_numbers<[1], [0], [0], [1], [0, 0, 1, 1], [], []>} : vector<16x16xbf16>, vector<16x128xbf16>, vector<16x128xf32> -> vector<16x128xf32>
    %7 = arith.addf %3, %6 : vector<16x128xf32>
    %c0_6 = arith.constant 0 : index
    %c0_7 = arith.constant 0 : index
    %8 = vector.load %arg7[%c0_6, %c0_7] : memref<16x128xf32, #tpu.memory_space<vmem>>, vector<16x128xf32>
    tpu.vector_store %arg7[%c0_6, %c0_7], %7 {strides = array<i32>} : memref<16x128xf32, #tpu.memory_space<vmem>>, vector<16x128xf32>,
    %c0_i32_8 = arith.constant 0 : i32
    %9 = arith.cmpi eq, %arg2, %c0_i32_8 : i32
    %10 = arith.extui %9 : i1 to i32
    %c0_i32_9 = arith.constant 0 : i32
    %11 = arith.cmpi ne, %10, %c0_i32_9 : i32
    scf.if %11 {
      %c0_10 = arith.constant 0 : index
      %c0_11 = arith.constant 0 : index
      %12 = vector.load %arg7[%c0_10, %c0_11] : memref<16x128xf32, #tpu.memory_space<vmem>>, vector<16x128xf32>
      %c0_12 = arith.constant 0 : index
      %c0_13 = arith.constant 0 : index
      %13 = vector.load %arg5[%c0_12, %c0_13] : memref<1x128xf32, #tpu.memory_space<vmem>>, vector<1x128xf32>
      %14 = vector.broadcast %13 : vector<1x128xf32> to vector<16x128xf32>
      %15 = arith.addf %12, %14 : vector<16x128xf32>
      %cst_14 = arith.constant 0.000000e+00 : f32
      %16 = vector.broadcast %cst_14 : f32 to vector<16x128xf32>
      %17 = arith.maximumf %15, %16 : vector<16x128xf32>
      %18 = arith.truncf %17 : vector<16x128xf32> to vector<16x128xbf16>
      %c0_15 = arith.constant 0 : index
      %c0_16 = arith.constant 0 : index
      %19 = vector.load %arg6[%c0_15, %c0_16] : memref<16x128xbf16, #tpu.memory_space<vmem>>, vector<16x128xbf16>
      tpu.vector_store %arg6[%c0_15, %c0_16], %18 {strides = array<i32>} : memref<16x128xbf16, #tpu.memory_space<vmem>>, vector<16x128xbf16>,
    } else {
    }
    return
  }
  func.func @transform_0(%arg0: i32, %arg1: i32, %arg2: i32) -> (i32, i32) {
    %c0_i32 = arith.constant 0 : i32
    return %arg0, %arg2 : i32, i32
  }
  func.func @transform_1(%arg0: i32, %arg1: i32, %arg2: i32) -> (i32, i32) {
    %c0_i32 = arith.constant 0 : i32
    return %arg2, %arg1 : i32, i32
  }
  func.func @transform_2(%arg0: i32, %arg1: i32, %arg2: i32) -> (i32, i32) {
    %c0_i32 = arith.constant 0 : i32
    %c0_i32_0 = arith.constant 0 : i32
    return %c0_i32, %arg1 : i32, i32
  }
  func.func @transform_3(%arg0: i32, %arg1: i32, %arg2: i32) -> (i32, i32) {
    %c0_i32 = arith.constant 0 : i32
    return %arg0, %arg1 : i32, i32
  }
}

module attributes {stable_mosaic.version = 11 : i64} {
  func.func @_matmul_bias_act_kernel(%arg0: i32, %arg1: i32, %arg2: i32, %arg3: memref<64x8xbf16, #tpu.memory_space<vmem>>, %arg4: memref<8x128xbf16, #tpu.memory_space<vmem>>, %arg5: memref<1x128xf32, #tpu.memory_space<vmem>>, %arg6: memref<64x128xf32, #tpu.memory_space<vmem>>, %arg7: memref<64x128xf32, #tpu.memory_space<vmem>>) attributes {dimension_semantics = [#tpu.dimension_semantics<parallel>, #tpu.dimension_semantics<parallel>, #tpu.dimension_semantics<arbitrary>], iteration_bounds = array<i64: 2, 1, 1>, scalar_prefetch = 0 : i64, scratch_operands = 1 : i64, tpu.core_type = #tpu.core_type<tc>, window_params = [{transform_indices = @transform_0, window_bounds = array<i64: 64, 8>}, {transform_indices = @transform_1, window_bounds = array<i64: 8, 128>}, {transform_indices = @transform_2, window_bounds = array<i64: 1, 128>}, {transform_indices = @transform_3, window_bounds = array<i64: 64, 128>}]} {
    %c0_i32 = arith.constant 0 : i32
    %0 = arith.cmpi eq, %arg2, %c0_i32 : i32
    %1 = arith.extui %0 : i1 to i32
    %c0_i32_0 = arith.constant 0 : i32
    %2 = arith.cmpi ne, %1, %c0_i32_0 : i32
    scf.if %2 {
      %cst_10 = arith.constant 0.000000e+00 : f32
      %12 = vector.broadcast %cst_10 : f32 to vector<64x128xf32>
      %c0_11 = arith.constant 0 : index
      %c0_12 = arith.constant 0 : index
      %13 = vector.load %arg7[%c0_11, %c0_12] : memref<64x128xf32, #tpu.memory_space<vmem>>, vector<64x128xf32>
      tpu.vector_store %arg7[%c0_11, %c0_12], %12 {strides = array<i32>} : memref<64x128xf32, #tpu.memory_space<vmem>>, vector<64x128xf32>,
    } else {
    }
    %c0 = arith.constant 0 : index
    %c0_1 = arith.constant 0 : index
    %3 = vector.load %arg7[%c0, %c0_1] : memref<64x128xf32, #tpu.memory_space<vmem>>, vector<64x128xf32>
    %c0_2 = arith.constant 0 : index
    %c0_3 = arith.constant 0 : index
    %4 = vector.load %arg3[%c0_2, %c0_3] : memref<64x8xbf16, #tpu.memory_space<vmem>>, vector<64x8xbf16>
    %c0_4 = arith.constant 0 : index
    %c0_5 = arith.constant 0 : index
    %5 = vector.load %arg4[%c0_4, %c0_5] : memref<8x128xbf16, #tpu.memory_space<vmem>>, vector<8x128xbf16>
    %cst = arith.constant dense<0.000000e+00> : vector<64x128xf32>
    %6 = tpu.matmul %4, %5, %cst {dimension_numbers = #tpu.dot_dimension_numbers<[1], [0], [0], [1], [0, 0, 1, 1], [], []>} : vector<64x8xbf16>, vector<8x128xbf16>, vector<64x128xf32> -> vector<64x128xf32>
    %7 = arith.addf %3, %6 : vector<64x128xf32>
    %c0_6 = arith.constant 0 : index
    %c0_7 = arith.constant 0 : index
    %8 = vector.load %arg7[%c0_6, %c0_7] : memref<64x128xf32, #tpu.memory_space<vmem>>, vector<64x128xf32>
    tpu.vector_store %arg7[%c0_6, %c0_7], %7 {strides = array<i32>} : memref<64x128xf32, #tpu.memory_space<vmem>>, vector<64x128xf32>,
    %c0_i32_8 = arith.constant 0 : i32
    %9 = arith.cmpi eq, %arg2, %c0_i32_8 : i32
    %10 = arith.extui %9 : i1 to i32
    %c0_i32_9 = arith.constant 0 : i32
    %11 = arith.cmpi ne, %10, %c0_i32_9 : i32
    scf.if %11 {
      %c0_10 = arith.constant 0 : index
      %c0_11 = arith.constant 0 : index
      %12 = vector.load %arg7[%c0_10, %c0_11] : memref<64x128xf32, #tpu.memory_space<vmem>>, vector<64x128xf32>
      %c0_12 = arith.constant 0 : index
      %c0_13 = arith.constant 0 : index
      %13 = vector.load %arg5[%c0_12, %c0_13] : memref<1x128xf32, #tpu.memory_space<vmem>>, vector<1x128xf32>
      %14 = vector.broadcast %13 : vector<1x128xf32> to vector<64x128xf32>
      %15 = arith.addf %12, %14 : vector<64x128xf32>
      %16 = arith.negf %15 : vector<64x128xf32>
      %17 = math.exp %16 : vector<64x128xf32>
      %cst_14 = arith.constant 1.000000e+00 : f32
      %18 = vector.broadcast %cst_14 : f32 to vector<64x128xf32>
      %19 = arith.addf %18, %17 : vector<64x128xf32>
      %20 = arith.divf %18, %19 : vector<64x128xf32>
      %c0_15 = arith.constant 0 : index
      %c0_16 = arith.constant 0 : index
      %21 = vector.load %arg6[%c0_15, %c0_16] : memref<64x128xf32, #tpu.memory_space<vmem>>, vector<64x128xf32>
      tpu.vector_store %arg6[%c0_15, %c0_16], %20 {strides = array<i32>} : memref<64x128xf32, #tpu.memory_space<vmem>>, vector<64x128xf32>,
    } else {
    }
    return
  }
  func.func @transform_0(%arg0: i32, %arg1: i32, %arg2: i32) -> (i32, i32) {
    %c0_i32 = arith.constant 0 : i32
    return %arg0, %arg2 : i32, i32
  }
  func.func @transform_1(%arg0: i32, %arg1: i32, %arg2: i32) -> (i32, i32) {
    %c0_i32 = arith.constant 0 : i32
    return %arg2, %arg1 : i32, i32
  }
  func.func @transform_2(%arg0: i32, %arg1: i32, %arg2: i32) -> (i32, i32) {
    %c0_i32 = arith.constant 0 : i32
    %c0_i32_0 = arith.constant 0 : i32
    return %c0_i32, %arg1 : i32, i32
  }
  func.func @transform_3(%arg0: i32, %arg1: i32, %arg2: i32) -> (i32, i32) {
    %c0_i32 = arith.constant 0 : i32
    return %arg0, %arg1 : i32, i32
  }
}

</mosaic_0001>

<bundles_post_ra>
// kernel: dae_forward.10
= control target key start
LH: loop header
LB: loop body
LE: loop exit
PB: predicated region body
PF: predicated region fallthrough
CT: control target
= control target key end

     0   :  { %s815_s12 = smov 0   ;;  %s817_s13 = smov 0   ;;  %s880_s0 = inlined_call_operand.vmem [shape: bf16[128,75], index: 0, kind: input, shape index: {}]   ;;  %s881_s1 = inlined_call_operand.vmem [shape: bf16[75,128], index: 1, kind: input, shape index: {}]   ;;  %s882_s2 = inlined_call_operand.vmem [shape: f32[1,128], index: 2, kind: input, shape index: {}]   ;;  %s883_s3 = inlined_call_operand.vmem [shape: bf16[128,128], index: 3, kind: output, shape index: {}]  }
   0x1   :  { %s819_s14 = smov 0  }
   0x2 LB: > { %s32_s15 = sadd.s32 1, %s788_s13  ;;  %p639_p0 = scmp.ge.s32.totalorder %s792_s14, 1  ;;  %s792_s14 = sphi %s819_s14, %s13_s14   ;;  %s788_s13 = sphi %s817_s13, %s885_s13   ;;  %s784_s12 = sphi %s815_s12, %s884_s12  }
   0x3   : > { %p34_p1 = scmp.ge.s32.totalorder %s32_s15, 2  ;;  %p188_p2 = scmp.lt.s32.totalorder %s792_s14, 3 }
   0x5   : > { %s887_s15 = smov (%p34_p1, %s32_s15), 0  ;;  %p189_p3 = pnand %p639_p0, %p188_p2 }
   0x6   : > { %v761_v0 = vld [vmem:[%s881_s1] sm:$0xff] (!%p189_p3)   ;;  %v762_v1 = vld [vmem:[%s881_s1 + $0x8] sm:$0xff] (!%p189_p3)   ;;  %vm360_vm0 = vcmask (!%p189_p3), 1044480   ;;  %v763_v2 = vld [vmem:[%s881_s1 + $0x10] sm:$0xff] (!%p189_p3)   ;;  %s640_s22 = sshll.u32 (!%p189_p3), %s784_s12, 3  ;;  %vm361_vm1 = vcmask (!%p189_p3), 1045504  }
   0x7   : > { %192 = sbr.rel (%p189_p3) target bundleno = 249 (0xf9), region = 32  ;;  %708 = vmatprep.subr.bf16.mxu0 (!%p189_p3), %v761_v0  ;;  %726 = vmatprep.subr.bf16.mxu1 (!%p189_p3), %v761_v0  ;;  %v794_v3 = vmov (!%p189_p3), 65535   ;;  %p230_p4 = scmp.lt.s32.totalorder (!%p189_p3), %s640_s22, 15  ;;  %v764_v5 = vld [vmem:[%s881_s1 + $0x18] sm:$0xff] (!%p189_p3)   ;;  %v765_v6 = vld [vmem:[%s881_s1 + $0x20] sm:$0x3f] (!%p189_p3)  }
   0x8   : > { %709 = vmatpush3.bf16.msra.mxu0 (!%p189_p3), %v761_v0  ;;  %731 = vmatpush3.bf16.msra.mxu1 (!%p189_p3), %v761_v0  ;;  %v362_v4 = vsel (!%p189_p3), %vm360_vm0, 4294967295, %v794_v3  ;;  %vm347_vm2 = vcmask (!%p189_p3), 613376   ;;  %v657_v13 = vld [vmem:[%s882_s2] ss:$0 sm:$0xff] (!%p189_p3) }
   0x9   : > { %710 = vmatprep.subr.bf16.mxu0 (!%p189_p3), %v762_v1  ;;  %727 = vmatprep.subr.bf16.mxu1 (!%p189_p3), %v762_v1  ;;  %v363_v7 = vsel (!%p189_p3), %vm361_vm1, %v362_v4, 0 }
   0xa   : > { %v365_v8 = vand.u32 (!%p189_p3), %v765_v6, %v363_v7 }
   0xc   : > { %711 = vmatpush3.bf16.msra.mxu0 (!%p189_p3), %v762_v1  ;;  %732 = vmatpush3.bf16.msra.mxu1 (!%p189_p3), %v762_v1 }
   0xd   : > { %712 = vmatprep.subr.bf16.mxu0 (!%p189_p3), %v763_v2  ;;  %728 = vmatprep.subr.bf16.mxu1 (!%p189_p3), %v763_v2 }
   0xe   : > { %s889_s22 = smov (!%p230_p4, %s640_s22), 15 }
   0xf   : > { %s641_s27 = sshll.u32 %s889_s22, 2 }
  0x10   : > { %713 = vmatpush3.bf16.msra.mxu0 %v763_v2  ;;  %733 = vmatpush3.bf16.msra.mxu1 %v763_v2  ;;  %s236_s30 = scalar_lea.vmem %s880_s0, %s641_s27  ;;  %s257_s8 = scalar_lea.vmem %s883_s3, %s641_s27 }
  0x11   : > { %714 = vmatprep.subr.bf16.mxu0 %v764_v5  ;;  %729 = vmatprep.subr.bf16.mxu1 %v764_v5  ;;  %v766_v9 = vld [vmem:[%s236_s30] sm:$0xff]   ;;  %v767_v10 = vld [vmem:[%s236_s30 + $0x10] sm:$0xff]   ;;  %v768_v11 = vld [vmem:[%s236_s30 + $0x8] sm:$0xff]  }
  0x12   : > { %718 = vmatprep.mubr.msk.bf16.mxu0 %vm347_vm2, %v766_v9  ;;  %722 = vmatprep.mubr.msk.bf16.mxu1 %vm347_vm2, %v767_v10  ;;  %v769_v12 = vld [vmem:[%s236_s30 + $0x18] sm:$0xff]  }
  0x14   : > { %715 = vmatpush3.bf16.msra.mxu0 %v764_v5  ;;  %734 = vmatpush3.bf16.msra.mxu1 %v764_v5 }
  0x15   : > { %716 = vmatprep.subr.bf16.mxu0 %v365_v8  ;;  %730 = vmatprep.subr.bf16.mxu1 %v365_v8 }
  0x18   : > { %717 = vmatpush3.bf16.msra.mxu0 %v365_v8  ;;  %735 = vmatpush3.bf16.msra.mxu1 %v365_v8 }
  0x1b   : > { %719 = vmatmul.mubr.msk.bf16.vlgmr.msra.gmra.mrb[0].mxu0 %vm347_vm2, %v768_v11  ;;  %723 = vmatmul.mubr.msk.bf16.vlgmr.msra.gmra.mrb[0].mxu1 %vm347_vm2, %v769_v12 }
  0xee   : > { %v720_v14 = vpop.f32.mrb[0].mxu0  ;;  %v724_v15 = vpop.f32.mrb[0].mxu1 }
  0xef   : > { %v468_v16 = vadd.f32 %v720_v14, %v657_v13  ;;  %v472_v17 = vadd.f32 %v724_v15, %v657_v13  ;;  %v401_v18 = vpop.f32.mrb[1].mxu0  ;;  %v417_v19 = vpop.f32.mrb[1].mxu1 }
  0xf0   : > { %v466_v20 = vadd.f32 %v657_v13, %v401_v18  ;;  %v470_v21 = vadd.f32 %v657_v13, %v417_v19  ;;  %v721_v22 = vpop.f32.mrb[2].mxu0  ;;  %v725_v23 = vpop.f32.mrb[2].mxu1 }
  0xf1   : > { %v469_v24 = vadd.f32 %v721_v22, %v657_v13  ;;  %v473_v25 = vadd.f32 %v725_v23, %v657_v13  ;;  %v404_v26 = vpop.f32.mrb[3].mxu0  ;;  %v420_v27 = vpop.f32.mrb[3].mxu1  ;;  %v476_v30 = vmax.f32 %v468_v16, 0.0  ;;  %v480_v31 = vmax.f32 %v472_v17, 0.0 }
  0xf2   : > { %v467_v28 = vadd.f32 %v657_v13, %v404_v26  ;;  %v471_v29 = vadd.f32 %v657_v13, %v420_v27  ;;  %v474_v34 = vmax.f32 %v466_v20, 0.0  ;;  %v478_v35 = vmax.f32 %v470_v21, 0.0 }
  0xf3   : > { %v477_v32 = vmax.f32 %v469_v24, 0.0  ;;  %v481_v33 = vmax.f32 %v473_v25, 0.0 }
  0xf4   : > { %v475_v36 = vmax.f32 %v467_v28, 0.0  ;;  %v479_v37 = vmax.f32 %v471_v29, 0.0 }
  0xf5   : > { %v684_v38 = vpack.c.bf16 %v477_v32, %v476_v30  ;;  %v694_v39 = vpack.c.bf16 %v481_v33, %v480_v31 }
  0xf6   : > { %v679_v40 = vpack.c.bf16 %v475_v36, %v474_v34  ;;  %v689_v41 = vpack.c.bf16 %v479_v37, %v478_v35 }
  0xf7   : > { %696 = vst [vmem:[%s257_s8 + $0x8] sm:$0xff] %v684_v38   ;;  %698 = vst [vmem:[%s257_s8 + $0x18] sm:$0xff] %v694_v39  }
  0xf8   : > { %680 = vst [vmem:[%s257_s8] sm:$0xff] %v679_v40   ;;  %697 = vst [vmem:[%s257_s8 + $0x10] sm:$0xff] %v689_v41  }
  0xf9 PF: > { %s13_s14 = sadd.s32 1, %s792_s14   ;;  %s884_s12 = smov %s788_s13 }
  0xfa   : > { %p10_p5 = scmp.ge.s32.totalorder %s13_s14, 4   ;;  %s885_s13 = smov %s887_s15 }
  0xfc   :  { %12 = sbr.rel (!%p10_p5) target bundleno = 2 (0x2), region = 76 }

// kernel: dae_forward.11
= control target key start
LH: loop header
LB: loop body
LE: loop exit
PB: predicated region body
PF: predicated region fallthrough
CT: control target
= control target key end

     0   :  { %s616_s12 = smov 0   ;;  %s618_s13 = smov 0   ;;  %s664_s0 = inlined_call_operand.vmem [shape: bf16[32,50], index: 0, kind: input, shape index: {}]   ;;  %s665_s1 = inlined_call_operand.vmem [shape: bf16[50,128], index: 1, kind: input, shape index: {}]   ;;  %s666_s2 = inlined_call_operand.vmem [shape: f32[1,128], index: 2, kind: input, shape index: {}]   ;;  %s667_s3 = inlined_call_operand.vmem [shape: bf16[32,128], index: 3, kind: output, shape index: {}]  }
   0x1   :  { %s620_s14 = smov 0  }
   0x2 LB: > { %s32_s15 = sadd.s32 1, %s588_s13  ;;  %p499_p0 = scmp.ge.s32.totalorder %s592_s14, 1  ;;  %s592_s14 = sphi %s620_s14, %s13_s14   ;;  %s588_s13 = sphi %s618_s13, %s669_s13   ;;  %s584_s12 = sphi %s616_s12, %s668_s12  }
   0x3   : > { %p34_p1 = scmp.ge.s32.totalorder %s32_s15, 2  ;;  %p188_p2 = scmp.lt.s32.totalorder %s592_s14, 3 }
   0x5   : > { %s671_s15 = smov (%p34_p1, %s32_s15), 0  ;;  %p189_p3 = pnand %p499_p0, %p188_p2 }
   0x6   : > { %v565_v0 = vld [vmem:[%s665_s1] sm:$0xff] (!%p189_p3)   ;;  %v594_v1 = vmov (!%p189_p3), 0.0   ;;  %v566_v2 = vld [vmem:[%s665_s1 + $0x8] sm:$0xff] (!%p189_p3)   ;;  %vm595_vm0 = vmmov (!%p189_p3), 0   ;;  %s500_s20 = sshll.u32 (!%p189_p3), %s584_s12, 1  ;;  %v567_v3 = vld [vmem:[%s665_s1 + $0x10] sm:$0xff] (!%p189_p3)  }
   0x7   : > { %192 = sbr.rel (%p189_p3) target bundleno = 244 (0xf4), region = 32  ;;  %527 = vmatprep.subr.bf16.mxu0 (!%p189_p3), %v594_v1  ;;  %535 = vmatprep.mubr.msk.bf16.mxu0 (!%p189_p3), %vm595_vm0, %v594_v1  ;;  %p230_p4 = scmp.lt.s32.totalorder (!%p189_p3), %s500_s20, 3  ;;  %v568_v4 = vld [vmem:[%s665_s1 + $0x18] ss:$0 sps:$4 sm:$0x11] (!%p189_p3)   ;;  %vm307_vm1 = vcmask (!%p189_p3), 1040384  }
   0x8   : > { %528 = vmatpush3.bf16.msra.mxu0 (!%p189_p3), %v565_v0  ;;  %v309_v5 = vsel (!%p189_p3), %vm307_vm1, %v568_v4, 0  ;;  %vm303_vm2 = vcmask (!%p189_p3), 408576   ;;  %v510_v7 = vld [vmem:[%s666_s2] ss:$0 sm:$0xff] (!%p189_p3) }
   0x9   : > { %529 = vmatprep.subr.bf16.mxu0 (!%p189_p3), %v594_v1 }
   0xc   : > { %530 = vmatpush3.bf16.msra.mxu0 (!%p189_p3), %v566_v2 }
   0xd   : > { %531 = vmatprep.subr.bf16.mxu0 (!%p189_p3), %v594_v1 }
   0xe   : > { %s673_s20 = smov (!%p230_p4, %s500_s20), 3 }
   0xf   : > { %s501_s25 = sshll.u32 %s673_s20, 2 }
  0x10   : > { %s236_s28 = scalar_lea.vmem %s664_s0, %s501_s25  ;;  %532 = vmatpush3.bf16.msra.mxu0 %v567_v3  ;;  %s257_s6 = scalar_lea.vmem %s667_s3, %s501_s25 }
  0x11   : > { %533 = vmatprep.subr.bf16.mxu0 %v594_v1  ;;  %v569_v6 = vld [vmem:[%s236_s28] sm:$0xff]  }
  0x14   : > { %534 = vmatpush3.bf16.msra.mxu0 %v309_v5 }
  0x17   : > { %536 = vmatmul.mubr.msk.bf16.vlgmr.msra.gmra.mrb[0].mxu0 %vm303_vm2, %v569_v6 }
  0xea   : > { %v345_v8 = vpop.f32.mrb[0].mxu0 }
  0xeb   : > { %v368_v9 = vadd.f32 %v510_v7, %v345_v8  ;;  %v537_v10 = vpop.f32.mrb[1].mxu0 }
  0xec   : > { %v348_v11 = vpop.f32.mrb[2].mxu0 }
  0xed   : > { %v369_v12 = vadd.f32 %v510_v7, %v348_v11  ;;  %v538_v13 = vpop.f32.mrb[3].mxu0  ;;  %v370_v14 = vmax.f32 %v368_v9, 0.0 }
  0xef   : > { %v371_v15 = vmax.f32 %v369_v12, 0.0 }
  0xf1   : > { %v520_v16 = vpack.c.bf16 %v371_v15, %v370_v14 }
  0xf3   : > { %521 = vst [vmem:[%s257_s6] sm:$0xff] %v520_v16  }
  0xf4 PF: > { %s13_s14 = sadd.s32 1, %s592_s14   ;;  %s668_s12 = smov %s588_s13 }
  0xf5   : > { %p10_p5 = scmp.ge.s32.totalorder %s13_s14, 4   ;;  %s669_s13 = smov %s671_s15 }
  0xf7   :  { %12 = sbr.rel (!%p10_p5) target bundleno = 2 (0x2), region = 76 }

// kernel: dae_forward.12
= control target key start
LH: loop header
LB: loop body
LE: loop exit
PB: predicated region body
PF: predicated region fallthrough
CT: control target
= control target key end

     0   :  { %v187_v0 = vmov 0.0   ;;  %vm188_vm0 = vmmov 0   ;;  %vm78_vm1 = vcmask 1041408   ;;  %vm74_vm2 = vcmask 818176   ;;  %s239_s1 = inlined_call_operand.vmem [shape: bf16[100,128], index: 1, kind: input, shape index: {}]   ;;  %s240_s0 = inlined_call_operand.vmem [shape: bf16[8,100], index: 0, kind: input, shape index: {}]   ;;  %s241_s2 = inlined_call_operand.vmem [shape: f32[1,128], index: 2, kind: input, shape index: {}]   ;;  %s242_s3 = inlined_call_operand.vmem [shape: bf16[8,128], index: 3, kind: output, shape index: {}]  }
   0x1   :  { %160 = vmatprep.subr.bf16.mxu0 %v187_v0  ;;  %v180_v1 = vld [vmem:[%s239_s1] sm:$0xff]   ;;  %174 = vmatprep.mubr.msk.bf16.mxu0 %vm188_vm0, %v187_v0  ;;  %v181_v2 = vld [vmem:[%s239_s1 + $0x8] sm:$0xff]   ;;  %v182_v3 = vld [vmem:[%s239_s1 + $0x10] sm:$0xff]  }
   0x2   :  { %161 = vmatpush3.bf16.msra.mxu0 %v180_v1  ;;  %v183_v4 = vld [vmem:[%s239_s1 + $0x18] sm:$0xff]   ;;  %v184_v5 = vld [vmem:[%s239_s1 + $0x20] sm:$0xff]   ;;  %v185_v6 = vld [vmem:[%s239_s1 + $0x28] sm:$0xff]  }
   0x3   :  { %162 = vmatprep.subr.bf16.mxu0 %v187_v0  ;;  %v186_v7 = vld [vmem:[%s239_s1 + $0x30] ss:$0 sps:$4 sm:$0x33]   ;;  %v21_v9 = vld [vmem:[%s240_s0] sm:$0xf] }
   0x4   :  { %v80_v8 = vsel %vm78_vm1, %v186_v7, 0  ;;  %v151_v10 = vld [vmem:[%s241_s2] ss:$0 sm:$0xff] }
   0x6   :  { %163 = vmatpush3.bf16.msra.mxu0 %v181_v2 }
   0x7   :  { %164 = vmatprep.subr.bf16.mxu0 %v187_v0 }
   0xa   :  { %165 = vmatpush3.bf16.msra.mxu0 %v182_v3 }
   0xb   :  { %166 = vmatprep.subr.bf16.mxu0 %v187_v0 }
   0xe   :  { %167 = vmatpush3.bf16.msra.mxu0 %v183_v4 }
   0xf   :  { %168 = vmatprep.subr.bf16.mxu0 %v187_v0 }
  0x12   :  { %169 = vmatpush3.bf16.msra.mxu0 %v184_v5 }
  0x13   :  { %170 = vmatprep.subr.bf16.mxu0 %v187_v0 }
  0x16   :  { %171 = vmatpush3.bf16.msra.mxu0 %v185_v6 }
  0x17   :  { %172 = vmatprep.subr.bf16.mxu0 %v187_v0 }
  0x1a   :  { %173 = vmatpush3.bf16.msra.mxu0 %v80_v8 }
  0x1d   :  { %175 = vmatmul.mubr.msk.bf16.vlgmr.msra.gmra.mrb[0].mxu0 %vm74_vm2, %v21_v9 }
  0xf0   :  { %v116_v11 = vpop.f32.mrb[0].mxu0 }
  0xf1   :  { %v135_v12 = vadd.f32 %v151_v10, %v116_v11  ;;  %v176_v13 = vpop.f32.mrb[1].mxu0 }
  0xf2   :  { %v119_v14 = vpop.f32.mrb[2].mxu0 }
  0xf3   :  { %v136_v15 = vmax.f32 %v135_v12, 0.0  ;;  %v177_v16 = vpop.f32.mrb[3].mxu0 }
  0xf5   :  { %v137_v17 = vpack.c.bf16 %v136_v15, %v136_v15 }
  0xf7   :  { %138 = vst [vmem:[%s242_s3] sm:$0xf] %v137_v17 }

// kernel: dae_forward.13
= control target key start
LH: loop header
LB: loop body
LE: loop exit
PB: predicated region body
PF: predicated region fallthrough
CT: control target
= control target key end

     0   :  { %v230_v0 = vmov 0   ;;  %vm128_vm0 = vcmask 588800   ;;  %vm132_vm1 = vcmask 1043456   ;;  %s299_s1 = inlined_call_operand.vmem [shape: bf16[200,128], index: 1, kind: input, shape index: {}]   ;;  %s300_s0 = inlined_call_operand.vmem [shape: bf16[8,200], index: 0, kind: input, shape index: {}]   ;;  %s301_s2 = inlined_call_operand.vmem [shape: f32[1,128], index: 2, kind: input, shape index: {}]   ;;  %s302_s3 = inlined_call_operand.vmem [shape: bf16[8,128], index: 3, kind: output, shape index: {}]  }
   0x1   :  { %136 = vmatprep.subr.bf16.mxu0 %v230_v0  ;;  %v215_v1 = vld [vmem:[%s299_s1] sm:$0xff]   ;;  %v216_v2 = vld [vmem:[%s299_s1 + $0x8] sm:$0xff]   ;;  %v217_v3 = vld [vmem:[%s299_s1 + $0x10] sm:$0xff]  }
   0x2   :  { %137 = vmatpush1.bf16.msra.mxu0 %v215_v1  ;;  %v218_v4 = vld [vmem:[%s299_s1 + $0x18] sm:$0xff]   ;;  %v21_v5 = vld [vmem:[%s300_s0] sm:$0xff]  ;;  %v220_v8 = vld [vmem:[%s299_s1 + $0x28] sm:$0xff]  }
   0x3   :  { %138 = vmatprep.subr.bf16.mxu0 %v230_v0  ;;  %v198_v6 = vcombine.high %v21_v5, %v21_v5  ;;  %v219_v7 = vld [vmem:[%s299_s1 + $0x20] sm:$0xff]   ;;  %v221_v9 = vld [vmem:[%s299_s1 + $0x30] sm:$0xff]   ;;  %v222_v10 = vld [vmem:[%s299_s1 + $0x38] sm:$0xff]   ;;  %v197_v17 = vcombine.low %v21_v5, %v21_v5 }
   0x4   :  { %v223_v11 = vld [vmem:[%s299_s1 + $0x40] sm:$0xff]   ;;  %v224_v12 = vld [vmem:[%s299_s1 + $0x48] sm:$0xff]   ;;  %v225_v13 = vld [vmem:[%s299_s1 + $0x50] sm:$0xff]  }
   0x5   :  { %212 = vmatprep.mubr.msk.bf16.mxu0 %vm128_vm0, %v198_v6  ;;  %v226_v14 = vld [vmem:[%s299_s1 + $0x58] sm:$0xff]   ;;  %v227_v15 = vld [vmem:[%s299_s1 + $0x60] ss:$0 sps:$4 sm:$0xff]  }
   0x6   :  { %139 = vmatpush1.bf16.msra.mxu0 %v216_v2  ;;  %v134_v16 = vsel %vm132_vm1, %v227_v15, 0  ;;  %v213_v18 = vld [vmem:[%s301_s2] ss:$0 sm:$0xff] }
   0x7   :  { %140 = vmatprep.subr.bf16.mxu0 %v230_v0 }
   0xa   :  { %141 = vmatpush1.bf16.msra.mxu0 %v217_v3 }
   0xb   :  { %142 = vmatprep.subr.bf16.mxu0 %v230_v0 }
   0xe   :  { %143 = vmatpush1.bf16.msra.mxu0 %v218_v4 }
   0xf   :  { %144 = vmatprep.subr.bf16.mxu0 %v230_v0 }
  0x12   :  { %145 = vmatpush1.bf16.msra.mxu0 %v219_v7 }
  0x13   :  { %146 = vmatprep.subr.bf16.mxu0 %v230_v0 }
  0x16   :  { %147 = vmatpush1.bf16.msra.mxu0 %v220_v8 }
  0x17   :  { %148 = vmatprep.subr.bf16.mxu0 %v230_v0 }
  0x1a   :  { %149 = vmatpush1.bf16.msra.mxu0 %v221_v9 }
  0x1b   :  { %150 = vmatprep.subr.bf16.mxu0 %v230_v0 }
  0x1e   :  { %151 = vmatpush1.bf16.msra.mxu0 %v222_v10 }
  0x1f   :  { %152 = vmatprep.subr.bf16.mxu0 %v230_v0 }
  0x22   :  { %153 = vmatpush1.bf16.msra.mxu0 %v223_v11 }
  0x23   :  { %154 = vmatprep.subr.bf16.mxu0 %v230_v0 }
  0x26   :  { %155 = vmatpush1.bf16.msra.mxu0 %v224_v12 }
  0x27   :  { %156 = vmatprep.subr.bf16.mxu0 %v230_v0 }
  0x2a   :  { %157 = vmatpush1.bf16.msra.mxu0 %v225_v13 }
  0x2b   :  { %158 = vmatprep.subr.bf16.mxu0 %v230_v0 }
  0x2e   :  { %159 = vmatpush1.bf16.msra.mxu0 %v226_v14 }
  0x2f   :  { %160 = vmatprep.subr.bf16.mxu0 %v230_v0 }
  0x32   :  { %161 = vmatpush1.bf16.msra.mxu0 %v134_v16 }
  0x35   :  { %169 = vmatmul.mubr.bf16.vlgmr.msra.gmra.mrb[0].mxu0 %v197_v17 }
 0x108   :  { %v170_v19 = vpop.f32.mrb[0].mxu0 }
 0x109   :  { %v189_v20 = vadd.f32 %v213_v18, %v170_v19  ;;  %v172_v21 = vpop.f32.mrb[1].mxu0 }
 0x10a   :  { %v173_v22 = vpop.f32.mrb[2].mxu0 }
 0x10b   :  { %v190_v23 = vmax.f32 %v189_v20, 0.0  ;;  %v174_v24 = vpop.f32.mrb[3].mxu0 }
 0x10d   :  { %v191_v25 = vpack.c.bf16 %v190_v23, %v190_v23 }
 0x10f   :  { %192 = vst [vmem:[%s302_s3] sm:$0xf] %v191_v25 }

// kernel: dae_forward.16
= control target key start
LH: loop header
LB: loop body
LE: loop exit
PB: predicated region body
PF: predicated region fallthrough
CT: control target
= control target key end

     0   :  { %v148_v0 = vmov 0.0   ;;  %vm149_vm0 = vmmov 0   ;;  %vm54_vm1 = vcmask 523264   ;;  %s191_s1 = inlined_call_operand.vmem [shape: bf16[64,128], index: 1, kind: input, shape index: {}]   ;;  %s192_s0 = inlined_call_operand.vmem [shape: bf16[8,64], index: 0, kind: input, shape index: {}]   ;;  %s193_s2 = inlined_call_operand.vmem [shape: f32[1,128], index: 2, kind: input, shape index: {}]   ;;  %s194_s3 = inlined_call_operand.vmem [shape: bf16[8,128], index: 3, kind: output, shape index: {}]  }
   0x1   :  { %130 = vmatprep.subr.bf16.mxu0 %v148_v0  ;;  %v144_v1 = vld [vmem:[%s191_s1] sm:$0xff]   ;;  %138 = vmatprep.mubr.msk.bf16.mxu0 %vm149_vm0, %v148_v0  ;;  %v145_v2 = vld [vmem:[%s191_s1 + $0x8] sm:$0xff]   ;;  %v146_v3 = vld [vmem:[%s191_s1 + $0x10] sm:$0xff]  }
   0x2   :  { %131 = vmatpush3.bf16.msra.mxu0 %v144_v1  ;;  %v147_v4 = vld [vmem:[%s191_s1 + $0x18] sm:$0xff]   ;;  %v21_v5 = vld [vmem:[%s192_s0] sm:$0xf] }
   0x3   :  { %132 = vmatprep.subr.bf16.mxu0 %v148_v0  ;;  %v124_v6 = vld [vmem:[%s193_s2] ss:$0 sm:$0xff] }
   0x6   :  { %133 = vmatpush3.bf16.msra.mxu0 %v145_v2 }
   0x7   :  { %134 = vmatprep.subr.bf16.mxu0 %v148_v0 }
   0xa   :  { %135 = vmatpush3.bf16.msra.mxu0 %v146_v3 }
   0xb   :  { %136 = vmatprep.subr.bf16.mxu0 %v148_v0 }
   0xe   :  { %137 = vmatpush3.bf16.msra.mxu0 %v147_v4 }
  0x11   :  { %139 = vmatmul.mubr.msk.bf16.vlgmr.msra.gmra.mrb[0].mxu0 %vm54_vm1, %v21_v5 }
  0xe4   :  { %v92_v7 = vpop.f32.mrb[0].mxu0 }
  0xe5   :  { %v111_v8 = vadd.f32 %v124_v6, %v92_v7  ;;  %v140_v9 = vpop.f32.mrb[1].mxu0 }
  0xe6   :  { %v95_v10 = vpop.f32.mrb[2].mxu0 }
  0xe7   :  { %v112_v11 = vmax.f32 %v111_v8, 0.0  ;;  %v141_v12 = vpop.f32.mrb[3].mxu0 }
  0xe9   :  { %v113_v13 = vpack.c.bf16 %v112_v11, %v112_v11 }
  0xeb   :  { %114 = vst [vmem:[%s194_s3] sm:$0xf] %v113_v13 }

// kernel: dae_forward.14
= control target key start
LH: loop header
LB: loop body
LE: loop exit
PB: predicated region body
PF: predicated region fallthrough
CT: control target
= control target key end

     0   :  { %v107_v0 = vmov 0.0   ;;  %vm108_vm0 = vmmov 0   ;;  %vm30_vm1 = vcmask 130048   ;;  %s141_s1 = inlined_call_operand.vmem [shape: bf16[16,128], index: 1, kind: input, shape index: {}]   ;;  %s142_s0 = inlined_call_operand.vmem [shape: bf16[8,16], index: 0, kind: input, shape index: {}]   ;;  %s143_s2 = inlined_call_operand.vmem [shape: f32[1,128], index: 2, kind: input, shape index: {}]   ;;  %s144_s3 = inlined_call_operand.vmem [shape: f32[8,128], index: 3, kind: output, shape index: {}]  }
   0x1   :  { %98 = vmatprep.subr.bf16.mxu0 %v107_v0  ;;  %v106_v1 = vld [vmem:[%s141_s1] sm:$0xff]   ;;  %100 = vmatprep.mubr.msk.bf16.mxu0 %vm108_vm0, %v107_v0 }
   0x2   :  { %99 = vmatpush3.bf16.msra.mxu0 %v106_v1  ;;  %v21_v2 = vld [vmem:[%s142_s0] sm:$0xf] }
   0x3   :  { %v95_v3 = vld [vmem:[%s143_s2] ss:$0 sm:$0xff] }
   0x5   :  { %101 = vmatmul.mubr.msk.bf16.vlgmr.msra.gmra.mrb[0].mxu0 %vm30_vm1, %v21_v2 }
  0xd8   :  { %v68_v4 = vpop.f32.mrb[0].mxu0 }
  0xd9   :  { %v87_v5 = vadd.f32 %v95_v3, %v68_v4  ;;  %v102_v6 = vpop.f32.mrb[1].mxu0 }
  0xda   :  { %v71_v7 = vpop.f32.mrb[2].mxu0 }
  0xdb   :  { %88 = vst [vmem:[%s144_s3] sm:$0xff] %v87_v5  ;;  %v103_v8 = vpop.f32.mrb[3].mxu0 }

// kernel: dae_forward.15
= control target key start
LH: loop header
LB: loop body
LE: loop exit
PB: predicated region body
PF: predicated region fallthrough
CT: control target
= control target key end

     0   :  { %vm27_vm0 = vcmask 1043456   ;;  %v104_v0 = vmov 0.0   ;;  %vm105_vm1 = vmmov 0   ;;  %vm23_vm2 = vcmask 64512   ;;  %s138_s1 = inlined_call_operand.vmem [shape: bf16[8,128], index: 1, kind: input, shape index: {}]   ;;  %s139_s0 = inlined_call_operand.vmem [shape: bf16[8,8], index: 0, kind: input, shape index: {}]   ;;  %s140_s2 = inlined_call_operand.vmem [shape: f32[1,128], index: 2, kind: input, shape index: {}]   ;;  %s141_s3 = inlined_call_operand.vmem [shape: bf16[8,128], index: 3, kind: output, shape index: {}]  }
   0x1   :  { %96 = vmatprep.subr.bf16.mxu0 %v104_v0  ;;  %v22_v1 = vld [vmem:[%s138_s1] sm:$0xf]  ;;  %98 = vmatprep.mubr.msk.bf16.mxu0 %vm105_vm1, %v104_v0 }
   0x2   :  { %v29_v2 = vsel %vm27_vm0, %v22_v1, 0  ;;  %v21_v3 = vld [vmem:[%s139_s0] sm:$0xf] }
   0x3   :  { %97 = vmatpush3.bf16.msra.mxu0 %v29_v2  ;;  %v93_v4 = vld [vmem:[%s140_s2] ss:$0 sm:$0xff] }
   0x6   :  { %99 = vmatmul.mubr.msk.bf16.vlgmr.msra.gmra.mrb[0].mxu0 %vm23_vm2, %v21_v3 }
  0xd9   :  { %v65_v5 = vpop.f32.mrb[0].mxu0 }
  0xda   :  { %v84_v6 = vadd.f32 %v93_v4, %v65_v5  ;;  %v100_v7 = vpop.f32.mrb[1].mxu0 }
  0xdb   :  { %v68_v8 = vpop.f32.mrb[2].mxu0 }
  0xdc   :  { %v85_v9 = vmax.f32 %v84_v6, 0.0  ;;  %v101_v10 = vpop.f32.mrb[3].mxu0 }
  0xde   :  { %v86_v11 = vpack.c.bf16 %v85_v9, %v85_v9 }
  0xe0   :  { %87 = vst [vmem:[%s141_s3] sm:$0xf] %v86_v11 }

// kernel: dae_forward.17
= control target key start
LH: loop header
LB: loop body
LE: loop exit
PB: predicated region body
PF: predicated region fallthrough
CT: control target
= control target key end

     0   :  { %v122_v0 = vmov 0.0   ;;  %vm123_vm0 = vmmov 0   ;;  %vm38_vm1 = vcmask 261120   ;;  %s159_s1 = inlined_call_operand.vmem [shape: bf16[32,128], index: 1, kind: input, shape index: {}]   ;;  %s160_s0 = inlined_call_operand.vmem [shape: bf16[8,32], index: 0, kind: input, shape index: {}]   ;;  %s161_s2 = inlined_call_operand.vmem [shape: f32[1,128], index: 2, kind: input, shape index: {}]   ;;  %s162_s3 = inlined_call_operand.vmem [shape: bf16[8,128], index: 3, kind: output, shape index: {}]  }
   0x1   :  { %110 = vmatprep.subr.bf16.mxu0 %v122_v0  ;;  %v120_v1 = vld [vmem:[%s159_s1] sm:$0xff]   ;;  %114 = vmatprep.mubr.msk.bf16.mxu0 %vm123_vm0, %v122_v0  ;;  %v121_v2 = vld [vmem:[%s159_s1 + $0x8] sm:$0xff]  }
   0x2   :  { %111 = vmatpush3.bf16.msra.mxu0 %v120_v1  ;;  %v21_v3 = vld [vmem:[%s160_s0] sm:$0xf] }
   0x3   :  { %112 = vmatprep.subr.bf16.mxu0 %v122_v0  ;;  %v106_v4 = vld [vmem:[%s161_s2] ss:$0 sm:$0xff] }
   0x6   :  { %113 = vmatpush3.bf16.msra.mxu0 %v121_v2 }
   0x9   :  { %115 = vmatmul.mubr.msk.bf16.vlgmr.msra.gmra.mrb[0].mxu0 %vm38_vm1, %v21_v3 }
  0xdc   :  { %v76_v5 = vpop.f32.mrb[0].mxu0 }
  0xdd   :  { %v95_v6 = vadd.f32 %v106_v4, %v76_v5  ;;  %v116_v7 = vpop.f32.mrb[1].mxu0 }
  0xde   :  { %v79_v8 = vpop.f32.mrb[2].mxu0 }
  0xdf   :  { %v96_v9 = vmax.f32 %v95_v6, 0.0  ;;  %v117_v10 = vpop.f32.mrb[3].mxu0 }
  0xe1   :  { %v97_v11 = vpack.c.bf16 %v96_v9, %v96_v9 }
  0xe3   :  { %98 = vst [vmem:[%s162_s3] sm:$0xf] %v97_v11 }

// kernel: dae_forward.18
= control target key start
LH: loop header
LB: loop body
LE: loop exit
PB: predicated region body
PF: predicated region fallthrough
CT: control target
= control target key end

     0   :  { %s577_s12 = smov 0   ;;  %s579_s13 = smov 0   ;;  %s616_s0 = inlined_call_operand.vmem [shape: bf16[32,16], index: 0, kind: input, shape index: {}]   ;;  %s617_s1 = inlined_call_operand.vmem [shape: bf16[16,128], index: 1, kind: input, shape index: {}]   ;;  %s618_s2 = inlined_call_operand.vmem [shape: f32[1,128], index: 2, kind: input, shape index: {}]   ;;  %s619_s3 = inlined_call_operand.vmem [shape: bf16[32,128], index: 3, kind: output, shape index: {}]  }
   0x1   :  { %s581_s14 = smov 0  }
   0x2 LB: > { %s32_s15 = sadd.s32 1, %s549_s13  ;;  %p475_p0 = scmp.ge.s32.totalorder %s553_s14, 1  ;;  %s553_s14 = sphi %s581_s14, %s13_s14   ;;  %s549_s13 = sphi %s579_s13, %s621_s13   ;;  %s545_s12 = sphi %s577_s12, %s620_s12  }
   0x3   : > { %p34_p1 = scmp.ge.s32.totalorder %s32_s15, 2  ;;  %p188_p2 = scmp.lt.s32.totalorder %s553_s14, 3 }
   0x5   : > { %s623_s15 = smov (%p34_p1, %s32_s15), 0  ;;  %p189_p3 = pnand %p475_p0, %p188_p2 }
   0x6   : > { %v529_v0 = vld [vmem:[%s617_s1] sm:$0xff] (!%p189_p3)   ;;  %v555_v1 = vmov (!%p189_p3), 0.0   ;;  %s476_s18 = sshll.u32 (!%p189_p3), %s545_s12, 1  ;;  %vm556_vm0 = vmmov (!%p189_p3), 0   ;;  %vm283_vm1 = vcmask (!%p189_p3), 130048  }
   0x7   : > { %192 = sbr.rel (%p189_p3) target bundleno = 239 (0xef), region = 32  ;;  %497 = vmatprep.subr.bf16.mxu0 (!%p189_p3), %v555_v1  ;;  %499 = vmatprep.mubr.msk.bf16.mxu0 (!%p189_p3), %vm556_vm0, %v555_v1  ;;  %p230_p4 = scmp.lt.s32.totalorder (!%p189_p3), %s476_s18, 3  ;;  %v483_v3 = vld [vmem:[%s618_s2] ss:$0 sm:$0xff] (!%p189_p3) }
   0x8   : > { %498 = vmatpush3.bf16.msra.mxu0 (!%p189_p3), %v529_v0 }
   0xe   : > { %s625_s18 = smov (!%p230_p4, %s476_s18), 3 }
   0xf   : > { %s477_s19 = sshll.u32 %s625_s18, 2 }
  0x10   : > { %s236_s22 = scalar_lea.vmem %s616_s0, %s477_s19  ;;  %s257_s27 = scalar_lea.vmem %s619_s3, %s477_s19 }
  0x11   : > { %v530_v2 = vld [vmem:[%s236_s22] sm:$0xff]  }
  0x12   : > { %500 = vmatmul.mubr.msk.bf16.vlgmr.msra.gmra.mrb[0].mxu0 %vm283_vm1, %v530_v2 }
  0xe5   : > { %v321_v4 = vpop.f32.mrb[0].mxu0 }
  0xe6   : > { %v344_v5 = vadd.f32 %v483_v3, %v321_v4  ;;  %v501_v6 = vpop.f32.mrb[1].mxu0 }
  0xe7   : > { %v324_v7 = vpop.f32.mrb[2].mxu0 }
  0xe8   : > { %v345_v8 = vadd.f32 %v483_v3, %v324_v7  ;;  %v502_v9 = vpop.f32.mrb[3].mxu0  ;;  %v346_v10 = vmax.f32 %v344_v5, 0.0 }
  0xea   : > { %v347_v11 = vmax.f32 %v345_v8, 0.0 }
  0xec   : > { %v493_v12 = vpack.c.bf16 %v347_v11, %v346_v10 }
  0xee   : > { %494 = vst [vmem:[%s257_s27] sm:$0xff] %v493_v12  }
  0xef PF: > { %s13_s14 = sadd.s32 1, %s553_s14   ;;  %s620_s12 = smov %s549_s13 }
  0xf0   : > { %p10_p5 = scmp.ge.s32.totalorder %s13_s14, 4   ;;  %s621_s13 = smov %s623_s15 }
  0xf2   :  { %12 = sbr.rel (!%p10_p5) target bundleno = 2 (0x2), region = 76 }

// kernel: dae_forward.19
= control target key start
LH: loop header
LB: loop body
LE: loop exit
PB: predicated region body
PF: predicated region fallthrough
CT: control target
= control target key end

     0   :  { %s748_s12 = smov 0   ;;  %s750_s13 = smov 0   ;;  %s791_s0 = inlined_call_operand.vmem [shape: bf16[128,8], index: 0, kind: input, shape index: {}]   ;;  %s792_s1 = inlined_call_operand.vmem [shape: bf16[8,128], index: 1, kind: input, shape index: {}]   ;;  %s793_s2 = inlined_call_operand.vmem [shape: f32[1,128], index: 2, kind: input, shape index: {}]   ;;  %s794_s3 = inlined_call_operand.vmem [shape: f32[128,128], index: 3, kind: output, shape index: {}]  }
   0x1   :  { %s752_s14 = smov 0  }
   0x2 LB: > { %s32_s15 = sadd.s32 1, %s722_s13  ;;  %p601_p0 = scmp.ge.s32.totalorder %s726_s14, 1  ;;  %s726_s14 = sphi %s752_s14, %s13_s14   ;;  %s722_s13 = sphi %s750_s13, %s796_s13   ;;  %s718_s12 = sphi %s748_s12, %s795_s12  }
   0x3   : > { %p34_p1 = scmp.ge.s32.totalorder %s32_s15, 2  ;;  %p186_p2 = scmp.lt.s32.totalorder %s726_s14, 3 }
   0x5   : > { %s798_s15 = smov (%p34_p1, %s32_s15), 0  ;;  %p187_p3 = pnand %p601_p0, %p186_p2 }
   0x6   : > { %v283_v0 = vld [vmem:[%s792_s1] sm:$0xf] (!%p187_p3)  ;;  %vm317_vm0 = vcmask (!%p187_p3), 1043456   ;;  %s602_s18 = sshll.u32 (!%p187_p3), %s718_s12, 3  ;;  %vm304_vm1 = vcmask (!%p187_p3), 64512  }
   0x7   : > { %190 = sbr.rel (%p187_p3) target bundleno = 267 (0x10b), region = 32  ;;  %642 = vmatprep.subr.msk.bf16.mxu0 (!%p187_p3), %vm317_vm0, %v283_v0  ;;  %643 = vmatprep.subr.msk.bf16.mxu1 (!%p187_p3), %vm317_vm0, %v283_v0  ;;  %v319_v1 = vsel (!%p187_p3), %vm317_vm0, %v283_v0, 0  ;;  %p227_p4 = scmp.lt.s32.totalorder (!%p187_p3), %s602_s18, 15  ;;  %v614_v6 = vld [vmem:[%s793_s2] ss:$0 sm:$0xff] (!%p187_p3) }
   0x8   : > { %631 = vmatpush3.bf16.msra.mxu0 (!%p187_p3), %v319_v1  ;;  %641 = vmatpush3.bf16.msra.mxu1 (!%p187_p3), %v319_v1 }
   0xe   : > { %s800_s18 = smov (!%p227_p4, %s602_s18), 15 }
   0xf   : > { %s603_s19 = sshll.u32 %s800_s18, 2  ;;  %s605_s25 = sshll.u32 %s800_s18, 3 }
  0x10   : > { %s233_s22 = scalar_lea.vmem %s791_s0, %s603_s19  ;;  %s252_s28 = scalar_lea.vmem %s794_s3, %s605_s25 }
  0x11   : > { %v668_v2 = vld [vmem:[%s233_s22] sm:$0xff]   ;;  %v669_v3 = vld [vmem:[%s233_s22 + $0x10] sm:$0xff]   ;;  %v670_v4 = vld [vmem:[%s233_s22 + $0x8] sm:$0xff]  }
  0x12   : > { %632 = vmatprep.mubr.msk.bf16.mxu0 %vm304_vm1, %v668_v2  ;;  %636 = vmatprep.mubr.msk.bf16.mxu1 %vm304_vm1, %v669_v3  ;;  %v671_v5 = vld [vmem:[%s233_s22 + $0x18] sm:$0xff]  }
  0x13   : > { %633 = vmatmul.mubr.msk.bf16.vlgmr.msra.gmra.mrb[0].mxu0 %vm304_vm1, %v670_v4  ;;  %637 = vmatmul.mubr.msk.bf16.vlgmr.msra.gmra.mrb[0].mxu1 %vm304_vm1, %v671_v5 }
  0xe6   : > { %v634_v7 = vpop.f32.mrb[0].mxu0  ;;  %v638_v9 = vpop.f32.mrb[0].mxu1 }
  0xe7   : > { %v422_v8 = vadd.f32 %v634_v7, %v614_v6  ;;  %v355_v10 = vpop.f32.mrb[1].mxu0  ;;  %v426_v11 = vadd.f32 %v638_v9, %v614_v6  ;;  %v371_v13 = vpop.f32.mrb[1].mxu1 }
  0xe8   : > { %v420_v12 = vadd.f32 %v614_v6, %v355_v10  ;;  %v635_v14 = vpop.f32.mrb[2].mxu0  ;;  %v424_v16 = vadd.f32 %v614_v6, %v371_v13  ;;  %v639_v18 = vpop.f32.mrb[2].mxu1 }
  0xe9   : > { %v617_v15 = vmul.f32 -1.442695, %v422_v8  ;;  %v423_v17 = vadd.f32 %v635_v14, %v614_v6  ;;  %v358_v19 = vpop.f32.mrb[3].mxu0  ;;  %v621_v20 = vmul.f32 -1.442695, %v426_v11  ;;  %v427_v22 = vadd.f32 %v639_v18, %v614_v6  ;;  %v374_v24 = vpop.f32.mrb[3].mxu1 }
  0xea   : > { %v615_v21 = vmul.f32 -1.442695, %v420_v12  ;;  %v421_v23 = vadd.f32 %v614_v6, %v358_v19  ;;  %v619_v25 = vmul.f32 -1.442695, %v424_v16  ;;  %v425_v27 = vadd.f32 %v614_v6, %v374_v24 }
  0xeb   : > { %672 = vpow2.f32 %v617_v15  ;;  %v618_v26 = vmul.f32 -1.442695, %v423_v17  ;;  %v622_v28 = vmul.f32 -1.442695, %v427_v22 }
  0xec   : > { %674 = vpow2.f32 %v621_v20  ;;  %v616_v29 = vmul.f32 -1.442695, %v421_v23  ;;  %v620_v30 = vmul.f32 -1.442695, %v425_v27 }
  0xed   : > { %676 = vpow2.f32 %v615_v21 }
  0xee   : > { %678 = vpow2.f32 %v619_v25 }
  0xef   : > { %680 = vpow2.f32 %v618_v26 }
  0xf0   : > { %682 = vpow2.f32 %v622_v28 }
  0xf1   : > { %684 = vpow2.f32 %v616_v29 }
  0xf2   : > { %686 = vpow2.f32 %v620_v30 }
  0xf5   : > { %v673_v31 = vpop.eup %672 }
  0xf6   : > { %v675_v32 = vpop.eup %674  ;;  %v454_v33 = vadd.f32 1.0, %v673_v31 }
  0xf7   : > { %v677_v34 = vpop.eup %676  ;;  %v458_v35 = vadd.f32 1.0, %v675_v32 }
  0xf8   : > { %v679_v36 = vpop.eup %678  ;;  %688 = vrcp.f32 %v454_v33  ;;  %v452_v37 = vadd.f32 1.0, %v677_v34 }
  0xf9   : > { %v681_v38 = vpop.eup %680  ;;  %690 = vrcp.f32 %v458_v35  ;;  %v456_v39 = vadd.f32 1.0, %v679_v36 }
  0xfa   : > { %v683_v40 = vpop.eup %682  ;;  %692 = vrcp.f32 %v452_v37  ;;  %v455_v41 = vadd.f32 1.0, %v681_v38 }
  0xfb   : > { %v685_v42 = vpop.eup %684  ;;  %694 = vrcp.f32 %v456_v39  ;;  %v459_v43 = vadd.f32 1.0, %v683_v40 }
  0xfc   : > { %v687_v44 = vpop.eup %686  ;;  %696 = vrcp.f32 %v455_v41  ;;  %v453_v45 = vadd.f32 1.0, %v685_v42 }
  0xfd   : > { %698 = vrcp.f32 %v459_v43  ;;  %v457_v46 = vadd.f32 1.0, %v687_v44 }
  0xfe   : > { %700 = vrcp.f32 %v453_v45 }
  0xff   : > { %702 = vrcp.f32 %v457_v46 }
 0x102   : > { %v689_v47 = vpop.eup %688 }
 0x103   : > { %v691_v48 = vpop.eup %690  ;;  %478 = vst [vmem:[%s252_s28 + $0x10] sm:$0xff] %v689_v47 }
 0x104   : > { %v693_v49 = vpop.eup %692  ;;  %482 = vst [vmem:[%s252_s28 + $0x30] sm:$0xff] %v691_v48 }
 0x105   : > { %v695_v50 = vpop.eup %694  ;;  %476 = vst [vmem:[%s252_s28] sm:$0xff] %v693_v49 }
 0x106   : > { %v697_v51 = vpop.eup %696  ;;  %480 = vst [vmem:[%s252_s28 + $0x20] sm:$0xff] %v695_v50 }
 0x107   : > { %v699_v52 = vpop.eup %698  ;;  %479 = vst [vmem:[%s252_s28 + $0x18] sm:$0xff] %v697_v51 }
 0x108   : > { %v701_v53 = vpop.eup %700  ;;  %483 = vst [vmem:[%s252_s28 + $0x38] sm:$0xff] %v699_v52 }
 0x109   : > { %v703_v54 = vpop.eup %702  ;;  %477 = vst [vmem:[%s252_s28 + $0x8] sm:$0xff] %v701_v53 }
 0x10a   : > { %481 = vst [vmem:[%s252_s28 + $0x28] sm:$0xff] %v703_v54 }
 0x10b PF: > { %s13_s14 = sadd.s32 1, %s726_s14   ;;  %s795_s12 = smov %s722_s13 }
 0x10c   : > { %p10_p5 = scmp.ge.s32.totalorder %s13_s14, 4   ;;  %s796_s13 = smov %s798_s15 }
 0x10e   :  { %12 = sbr.rel (!%p10_p5) target bundleno = 2 (0x2), region = 76 }

</bundles_post_ra>
